<compile_context>
chip_gen: v6e
topology: v6e:2x2x1
jax: 0.10.0
libtpu: 0.0.40
codegen_flags: <defaults>
</compile_context>

<pallas_src>
import jax
import jax.numpy as jnp
import numpy as np
from jax import lax
from jax.experimental import pallas as pl
from jax.experimental.pallas import tpu as pltpu


def _vmem_spec():
    return pl.BlockSpec(memory_space=pltpu.MemorySpace.VMEM)


# ------------------------------------------------------------------ fused kernel
def make_fused_kernel(cfg):
    B, T, H = cfg["B"], cfg["T"], cfg["H"]
    L, D, F = cfg["L"], cfg["D"], cfg["F"]
    vocab = cfg["vocab"]
    kernel_sizes = cfg["kernel_sizes"]
    n_br = len(kernel_sizes)
    nF = n_br * F
    k_max = max(kernel_sizes)
    pad_max = max(k - 2 for k in kernel_sizes)
    Lpm = L + 2 * pad_max                      # per-batch padded length
    N = B * Lpm                                # total rows of padded conv buffer

    def kernel(text_ref, time_ref, static_ref, emb_ref, sel_ref,
               w_in_ref, b_in_ref, w_hh_ref, b_hh_ref,
               cw_ref, cb_ref, pmask_ref,
               w1_ref, b1_ref, w2_ref, b2_ref,
               out_ref, netout_ref, gi_ref):
        f32 = jnp.float32

        # ---------------- GRU branch ----------------
        # Hoisted, merged (r|z|n) input projection for all timesteps in one
        # matmul (gruEmbed already folded into w_in/b_in offline).  Stored to a
        # VMEM scratch so the recurrence pulls rows {b*T + t} with a stride-T ds.
        gi_ref[...] = (jnp.dot(time_ref[...], w_in_ref[...],
                               preferred_element_type=f32) + b_in_ref[...])
        whh = w_hh_ref[...]                                  # (H, 3H)
        bhh = b_hh_ref[...]                                  # (1, 3H)

        h = jnp.zeros((B, H), f32)
        for t in range(T):            # static unroll: only the h-dep serializes
            xt = gi_ref[pl.ds(t, B, stride=T), :]            # (B, 3H)
            hh = jnp.dot(h, whh, preferred_element_type=f32) + bhh   # (B, 3H)
            r = jax.nn.sigmoid(xt[:, :H] + hh[:, :H])
            z = jax.nn.sigmoid(xt[:, H:2 * H] + hh[:, H:2 * H])
            n = jnp.tanh(xt[:, 2 * H:] + r * hh[:, 2 * H:])
            h = (1.0 - z) * n + z * h
        gru_hn = h                                           # (B, H)

        # ---------------- text-CNN branch ----------------
        # In-kernel embedding gather via one-hot matmul (fine at toy vocab).
        idx = text_ref[...]                                  # (B*L, 1) int32
        iota = lax.broadcasted_iota(jnp.int32, (B * L, vocab), 1)
        onehot = (iota == idx).astype(f32)                   # (B*L, vocab)
        emb_flat = jnp.dot(onehot, emb_ref[...],
                           preferred_element_type=f32)       # (B*L, D)
        # Zero-padded per-batch buffer via ONE aligned matmul against a static
        # 0/1 selection matrix (replaces O(B) misaligned concatenates).
        emb_pad = jnp.dot(sel_ref[...], emb_flat,
                          preferred_element_type=f32)        # (B*Lpm, D)

        # Shared tap loop across all branches; bias folded into tap 0.
        acc = jnp.dot(emb_pad, cw_ref[0], preferred_element_type=f32) + cb_ref[...]
        for j in range(1, k_max):
            # == jnp.roll(emb_pad, -j, axis=0); wrapped rows never reach a
            # valid pooling window, so they are masked out below.
            shifted = pltpu.roll(emb_pad, shift=(N - j) % N, axis=0)
            acc = acc + jnp.dot(shifted, cw_ref[j], preferred_element_type=f32)
        act = jnp.maximum(acc, 0.0)                          # (B*Lpm, nF)

        # One masked max-pool for all branches: additive -1e30 mask outside
        # each branch's valid conv-output window, then a single reduction.
        act3 = act.reshape(B, Lpm, nF)
        pooled = jnp.max(act3 + pmask_ref[...], axis=1)      # (B, nF)

        # ---------------- fusion + MLP head ----------------
        net = jnp.concatenate([gru_hn, pooled, static_ref[...]], axis=1)
        netout_ref[...] = net
        # TODO(synk): nn.Dropout in seqFc is the identity here (eval-mode only).
        hfc = jnp.maximum(jnp.dot(net, w1_ref[...], preferred_element_type=f32)
                          + b1_ref[...], 0.0)
        out_ref[...] = (jnp.dot(hfc, w2_ref[...], preferred_element_type=f32)
                        + b2_ref[...])

    return kernel


# ------------------------------------------------------------------ param folding
def prepare_params(raw, cfg):
    """Offline folding: gruEmbed into GRU input proj (merged gates), per-tap
    concatenated conv weights, static selection matrix and pooling mask."""
    kernel_sizes = cfg["kernel_sizes"]
    assert all(k >= 2 for k in kernel_sizes), "padding=(k-2,0) requires k >= 2"
    B, L, D, F = cfg["B"], cfg["L"], cfg["D"], cfg["F"]
    n_br = len(kernel_sizes)
    k_max = max(kernel_sizes)
    pad_max = max(k - 2 for k in kernel_sizes)
    Lpm = L + 2 * pad_max

    # gruEmbed folded into GRU input projection; gates kept merged (r|z|n).
    w_in = raw["we"] @ raw["wih"]                        # (I_time, 3H)
    b_in = raw["be"] @ raw["wih"] + raw["bih"]           # (1, 3H)

    # conv taps: zero-pad each branch to k_max taps, concat along output axis.
    taps = []
    for j in range(k_max):
        blocks = [raw["conv_w"][bi][j] if j < k else jnp.zeros((D, F), jnp.float32)
                  for bi, k in enumerate(kernel_sizes)]
        taps.append(jnp.concatenate(blocks, axis=1))     # (D, n_br*F)
    cw = jnp.stack(taps, axis=0)                         # (k_max, D, n_br*F)
    cb = jnp.concatenate(list(raw["conv_b"]), axis=1)    # (1, n_br*F)

    # Static 0/1 selection matrix: scatters (B*L, D) embeddings into the
    # zero-padded (B*Lpm, D) conv buffer with one aligned matmul.
    sel = np.zeros((B * Lpm, B * L), np.float32)
    for b in range(B):
        for l in range(L):
            sel[b * Lpm + pad_max + l, b * L + l] = 1.0

    # Additive pooling mask: 0 inside each branch's valid conv-output window
    # (per-branch tap-shift offsets folded in), -1e30 elsewhere.
    pmask = np.full((Lpm, n_br * F), -1e30, np.float32)
    for bi, k in enumerate(kernel_sizes):
        pad_k = k - 2
        off = pad_max - pad_k
        l_out = L + 2 * pad_k - k + 1                    # PyTorch conv out length
        pmask[off:off + l_out, bi * F:(bi + 1) * F] = 0.0

    return (raw["emb_table"], jnp.asarray(sel),
            w_in, b_in, raw["whh"], raw["bhh"],
            cw, cb, jnp.asarray(pmask),
            raw["w1"], raw["b1"], raw["w2"], raw["b2"])


# ------------------------------------------------------------------ forward
def make_forward(cfg):
    kernel = make_fused_kernel(cfg)
    B, T, L = cfg["B"], cfg["T"], cfg["L"]
    H, D, F = cfg["H"], cfg["D"], cfg["F"]
    I, S = cfg["I_time"], cfg["S"]
    vocab, C, fcH = cfg["vocab"], cfg["numClasses"], cfg["fcH"]
    kernel_sizes = cfg["kernel_sizes"]
    n_br = len(kernel_sizes)
    nF = n_br * F
    k_max = max(kernel_sizes)
    pad_max = max(k - 2 for k in kernel_sizes)
    Lpm = L + 2 * pad_max
    total = H + nF + S

    flops = int(
        2 * (B * T) * I * 3 * H                # hoisted GRU input projection
        + 2 * T * B * H * 3 * H                # GRU recurrence
        + 2 * (B * L) * vocab * D              # one-hot embedding gather
        + 2 * (B * Lpm) * (B * L) * D          # padded-buffer selection matmul
        + 2 * k_max * (B * Lpm) * D * nF       # shared conv taps
        + 2 * B * total * fcH + 2 * B * fcH * C
    )
    transcendentals = 3 * T * B * H
    bytes_accessed = 4 * int(
        B * L + B * T * I + B * S + vocab * D + (B * Lpm) * (B * L)
        + I * 3 * H + 3 * H + H * 3 * H + 3 * H
        + k_max * D * nF + nF + Lpm * nF
        + total * fcH + fcH + fcH * C + C
        + B * C + B * total
    )
    cost = pl.CostEstimate(flops=flops, transcendentals=transcendentals,
                           bytes_accessed=bytes_accessed)
    n_args = 3 + 13

    # NOTE: at realistic batch sizes add a batch grid with
    # dimension_semantics=("parallel",) so both v7x TensorCores get work; at
    # this toy size a grid-less single-call kernel is the right shape.

    @jax.jit
    def forward(text_input, time_input, static_input, kparams):
        # free layout views only — no transpose / astype / pad XLA ops
        text2d = text_input.reshape(B * L, 1)
        time2d = time_input.reshape(B * T, I)
        args = (text2d, time2d, static_input) + tuple(kparams)
        out, netout = pl.pallas_call(
            kernel,
            out_shape=(jax.ShapeDtypeStruct((B, C), jnp.float32),
                       jax.ShapeDtypeStruct((B, total), jnp.float32)),
            in_specs=[_vmem_spec()] * n_args,
            out_specs=(_vmem_spec(), _vmem_spec()),
            scratch_shapes=[pltpu.VMEM((B * T, 3 * H), jnp.float32)],
            cost_estimate=cost,
        )(*args)
        return out, netout

    return forward


# ------------------------------------------------------------------ main
if __name__ == "__main__":
    # small, module-consistent shapes
    B = 2
    numClasses = 5
    fcHiddenSize = 32
    T, timeInputSize = 8, 8
    gruInputSize, gruHiddenSize = 16, 16
    vocabSize, embeddingDim = 50, 16
    numFilters = 8
    kernelSizes = (2, 3, 4)
    staticInputSize = 6
    L = 12  # text sequence length

    key = jax.random.PRNGKey(0)
    ks = iter(jax.random.split(key, 32))

    def init(shape, scale=0.1):
        return jax.random.normal(next(ks), shape, jnp.float32) * scale

    raw_params = {
        # gruEmbed: Linear(timeInputSize -> gruInputSize), stored (in, out)
        "we": init((timeInputSize, gruInputSize)),
        "be": init((1, gruInputSize)),
        # GRU (PyTorch gate order r, z, n), stored transposed: (in, 3H) / (H, 3H)
        "wih": init((gruInputSize, 3 * gruHiddenSize)),
        "bih": init((1, 3 * gruHiddenSize)),
        "whh": init((gruHiddenSize, 3 * gruHiddenSize)),
        "bhh": init((1, 3 * gruHiddenSize)),
        # embedding table (stands in for embeddingModel.vectors)
        "emb_table": init((vocabSize, embeddingDim), scale=1.0),
        # conv weights stored as (k, D, F)  (<=> PyTorch (F, 1, k, D))
        "conv_w": tuple(init((k, embeddingDim, numFilters)) for k in kernelSizes),
        "conv_b": tuple(init((1, numFilters)) for _ in kernelSizes),
        # seqFc
        "w1": init((gruHiddenSize + len(kernelSizes) * numFilters + staticInputSize,
                    fcHiddenSize)),
        "b1": init((1, fcHiddenSize)),
        "w2": init((fcHiddenSize, numClasses)),
        "b2": init((1, numClasses)),
    }

    cfg = dict(B=B, T=T, L=L, H=gruHiddenSize, D=embeddingDim, F=numFilters,
               vocab=vocabSize, S=staticInputSize, I_time=timeInputSize,
               numClasses=numClasses, fcH=fcHiddenSize, kernel_sizes=kernelSizes)

    kparams = prepare_params(raw_params, cfg)   # one-time offline folding

    text_input = jax.random.randint(next(ks), (B, L), 0, vocabSize, dtype=jnp.int32)
    time_input = jax.random.normal(next(ks), (B, T, timeInputSize), jnp.float32)
    static_input = jax.random.normal(next(ks), (B, staticInputSize), jnp.float32)

    forward = make_forward(cfg)
    output, networks_output = forward(text_input, time_input, static_input, kparams)
    jax.block_until_ready((output, networks_output))

    expected_feat = gruHiddenSize + len(kernelSizes) * numFilters + staticInputSize
    assert output.shape == (B, numClasses)
    assert networks_output.shape == (B, expected_feat)
    assert jnp.all(jnp.isfinite(output)) and jnp.all(jnp.isfinite(networks_output))

    print("KERNEL_OK")
</pallas_src>

<mosaic_0001>
module attributes {stable_mosaic.version = 11 : i64} {
  func.func @kernel(%arg0: memref<24x1xi32, #tpu.memory_space<vmem>>, %arg1: memref<16x8xf32, #tpu.memory_space<vmem>>, %arg2: memref<2x6xf32, #tpu.memory_space<vmem>>, %arg3: memref<50x16xf32, #tpu.memory_space<vmem>>, %arg4: memref<32x24xf32, #tpu.memory_space<vmem>>, %arg5: memref<8x48xf32, #tpu.memory_space<vmem>>, %arg6: memref<1x48xf32, #tpu.memory_space<vmem>>, %arg7: memref<16x48xf32, #tpu.memory_space<vmem>>, %arg8: memref<1x48xf32, #tpu.memory_space<vmem>>, %arg9: memref<4x16x24xf32, #tpu.memory_space<vmem>>, %arg10: memref<1x24xf32, #tpu.memory_space<vmem>>, %arg11: memref<16x24xf32, #tpu.memory_space<vmem>>, %arg12: memref<46x32xf32, #tpu.memory_space<vmem>>, %arg13: memref<1x32xf32, #tpu.memory_space<vmem>>, %arg14: memref<32x5xf32, #tpu.memory_space<vmem>>, %arg15: memref<1x5xf32, #tpu.memory_space<vmem>>, %arg16: memref<2x5xf32, #tpu.memory_space<vmem>>, %arg17: memref<2x46xf32, #tpu.memory_space<vmem>>, %arg18: memref<16x48xf32, #tpu.memory_space<vmem>>) attributes {dimension_semantics = [], scalar_prefetch = 0 : i64, scratch_operands = 1 : i64, tpu.core_type = #tpu.core_type<tc>} {
    %c0 = arith.constant 0 : index
    %c0_0 = arith.constant 0 : index
    %0 = vector.load %arg1[%c0, %c0_0] : memref<16x8xf32, #tpu.memory_space<vmem>>, vector<16x8xf32>
    %c0_1 = arith.constant 0 : index
    %c0_2 = arith.constant 0 : index
    %1 = vector.load %arg5[%c0_1, %c0_2] : memref<8x48xf32, #tpu.memory_space<vmem>>, vector<8x48xf32>
    %cst = arith.constant dense<0.000000e+00> : vector<16x48xf32>
    %2 = tpu.matmul %0, %1, %cst {dimension_numbers = #tpu.dot_dimension_numbers<[1], [0], [0], [1], [0, 0, 1, 1], [], []>} : vector<16x8xf32>, vector<8x48xf32>, vector<16x48xf32> -> vector<16x48xf32>
    %c0_3 = arith.constant 0 : index
    %c0_4 = arith.constant 0 : index
    %3 = vector.load %arg6[%c0_3, %c0_4] : memref<1x48xf32, #tpu.memory_space<vmem>>, vector<1x48xf32>
    %4 = vector.broadcast %3 : vector<1x48xf32> to vector<16x48xf32>
    %5 = arith.addf %2, %4 : vector<16x48xf32>
    %c0_5 = arith.constant 0 : index
    %c0_6 = arith.constant 0 : index
    %6 = vector.load %arg18[%c0_5, %c0_6] : memref<16x48xf32, #tpu.memory_space<vmem>>, vector<16x48xf32>
    tpu.vector_store %arg18[%c0_5, %c0_6], %5 {strides = array<i32>} : memref<16x48xf32, #tpu.memory_space<vmem>>, vector<16x48xf32>,
    %c0_7 = arith.constant 0 : index
    %c0_8 = arith.constant 0 : index
    %7 = vector.load %arg7[%c0_7, %c0_8] : memref<16x48xf32, #tpu.memory_space<vmem>>, vector<16x48xf32>
    %c0_9 = arith.constant 0 : index
    %c0_10 = arith.constant 0 : index
    %8 = vector.load %arg8[%c0_9, %c0_10] : memref<1x48xf32, #tpu.memory_space<vmem>>, vector<1x48xf32>
    %cst_11 = arith.constant 0.000000e+00 : f32
    %9 = vector.broadcast %cst_11 : f32 to vector<2x16xf32>
    %c0_12 = arith.constant 0 : index
    %c0_13 = arith.constant 0 : index
    %10 = tpu.strided_load %arg18[%c0_12, %c0_13] {strides = array<i32: 8, 1>} : memref<16x48xf32, #tpu.memory_space<vmem>>, vector<2x48xf32>
    %cst_14 = arith.constant dense<0.000000e+00> : vector<2x48xf32>
    %11 = tpu.matmul %9, %7, %cst_14 {dimension_numbers = #tpu.dot_dimension_numbers<[1], [0], [0], [1], [0, 0, 1, 1], [], []>} : vector<2x16xf32>, vector<16x48xf32>, vector<2x48xf32> -> vector<2x48xf32>
    %12 = vector.broadcast %8 : vector<1x48xf32> to vector<2x48xf32>
    %13 = arith.addf %11, %12 : vector<2x48xf32>
    %14 = vector.extract_strided_slice %10 {offsets = [0, 0], sizes = [2, 16], strides = [1, 1]} : vector<2x48xf32> to vector<2x16xf32>
    %15 = vector.extract_strided_slice %13 {offsets = [0, 0], sizes = [2, 16], strides = [1, 1]} : vector<2x48xf32> to vector<2x16xf32>
    %16 = arith.addf %14, %15 : vector<2x16xf32>
    %17 = arith.negf %16 : vector<2x16xf32>
    %18 = math.exp %17 : vector<2x16xf32>
    %cst_15 = arith.constant 1.000000e+00 : f32
    %19 = vector.broadcast %cst_15 : f32 to vector<2x16xf32>
    %20 = arith.addf %19, %18 : vector<2x16xf32>
    %21 = arith.divf %19, %20 : vector<2x16xf32>
    %22 = vector.extract_strided_slice %10 {offsets = [0, 16], sizes = [2, 16], strides = [1, 1]} : vector<2x48xf32> to vector<2x16xf32>
    %23 = vector.extract_strided_slice %13 {offsets = [0, 16], sizes = [2, 16], strides = [1, 1]} : vector<2x48xf32> to vector<2x16xf32>
    %24 = arith.addf %22, %23 : vector<2x16xf32>
    %25 = arith.negf %24 : vector<2x16xf32>
    %26 = math.exp %25 : vector<2x16xf32>
    %cst_16 = arith.constant 1.000000e+00 : f32
    %27 = vector.broadcast %cst_16 : f32 to vector<2x16xf32>
    %28 = arith.addf %27, %26 : vector<2x16xf32>
    %29 = arith.divf %27, %28 : vector<2x16xf32>
    %30 = vector.extract_strided_slice %10 {offsets = [0, 32], sizes = [2, 16], strides = [1, 1]} : vector<2x48xf32> to vector<2x16xf32>
    %31 = vector.extract_strided_slice %13 {offsets = [0, 32], sizes = [2, 16], strides = [1, 1]} : vector<2x48xf32> to vector<2x16xf32>
    %32 = arith.mulf %21, %31 : vector<2x16xf32>
    %33 = arith.addf %30, %32 : vector<2x16xf32>
    %34 = math.tanh %33 : vector<2x16xf32>
    %cst_17 = arith.constant 1.000000e+00 : f32
    %35 = vector.broadcast %cst_17 : f32 to vector<2x16xf32>
    %36 = arith.subf %35, %29 : vector<2x16xf32>
    %37 = arith.mulf %36, %34 : vector<2x16xf32>
    %38 = arith.mulf %29, %9 : vector<2x16xf32>
    %39 = arith.addf %37, %38 : vector<2x16xf32>
    %c1 = arith.constant 1 : index
    %c0_18 = arith.constant 0 : index
    %40 = tpu.strided_load %arg18[%c1, %c0_18] {strides = array<i32: 8, 1>} : memref<16x48xf32, #tpu.memory_space<vmem>>, vector<2x48xf32>
    %cst_19 = arith.constant dense<0.000000e+00> : vector<2x48xf32>
    %41 = tpu.matmul %39, %7, %cst_19 {dimension_numbers = #tpu.dot_dimension_numbers<[1], [0], [0], [1], [0, 0, 1, 1], [], []>} : vector<2x16xf32>, vector<16x48xf32>, vector<2x48xf32> -> vector<2x48xf32>
    %42 = vector.broadcast %8 : vector<1x48xf32> to vector<2x48xf32>
    %43 = arith.addf %41, %42 : vector<2x48xf32>
    %44 = vector.extract_strided_slice %40 {offsets = [0, 0], sizes = [2, 16], strides = [1, 1]} : vector<2x48xf32> to vector<2x16xf32>
    %45 = vector.extract_strided_slice %43 {offsets = [0, 0], sizes = [2, 16], strides = [1, 1]} : vector<2x48xf32> to vector<2x16xf32>
    %46 = arith.addf %44, %45 : vector<2x16xf32>
    %47 = arith.negf %46 : vector<2x16xf32>
    %48 = math.exp %47 : vector<2x16xf32>
    %cst_20 = arith.constant 1.000000e+00 : f32
    %49 = vector.broadcast %cst_20 : f32 to vector<2x16xf32>
    %50 = arith.addf %49, %48 : vector<2x16xf32>
    %51 = arith.divf %49, %50 : vector<2x16xf32>
    %52 = vector.extract_strided_slice %40 {offsets = [0, 16], sizes = [2, 16], strides = [1, 1]} : vector<2x48xf32> to vector<2x16xf32>
    %53 = vector.extract_strided_slice %43 {offsets = [0, 16], sizes = [2, 16], strides = [1, 1]} : vector<2x48xf32> to vector<2x16xf32>
    %54 = arith.addf %52, %53 : vector<2x16xf32>
    %55 = arith.negf %54 : vector<2x16xf32>
    %56 = math.exp %55 : vector<2x16xf32>
    %cst_21 = arith.constant 1.000000e+00 : f32
    %57 = vector.broadcast %cst_21 : f32 to vector<2x16xf32>
    %58 = arith.addf %57, %56 : vector<2x16xf32>
    %59 = arith.divf %57, %58 : vector<2x16xf32>
    %60 = vector.extract_strided_slice %40 {offsets = [0, 32], sizes = [2, 16], strides = [1, 1]} : vector<2x48xf32> to vector<2x16xf32>
    %61 = vector.extract_strided_slice %43 {offsets = [0, 32], sizes = [2, 16], strides = [1, 1]} : vector<2x48xf32> to vector<2x16xf32>
    %62 = arith.mulf %51, %61 : vector<2x16xf32>
    %63 = arith.addf %60, %62 : vector<2x16xf32>
    %64 = math.tanh %63 : vector<2x16xf32>
    %cst_22 = arith.constant 1.000000e+00 : f32
    %65 = vector.broadcast %cst_22 : f32 to vector<2x16xf32>
    %66 = arith.subf %65, %59 : vector<2x16xf32>
    %67 = arith.mulf %66, %64 : vector<2x16xf32>
    %68 = arith.mulf %59, %39 : vector<2x16xf32>
    %69 = arith.addf %67, %68 : vector<2x16xf32>
    %c2 = arith.constant 2 : index
    %c0_23 = arith.constant 0 : index
    %70 = tpu.strided_load %arg18[%c2, %c0_23] {strides = array<i32: 8, 1>} : memref<16x48xf32, #tpu.memory_space<vmem>>, vector<2x48xf32>
    %cst_24 = arith.constant dense<0.000000e+00> : vector<2x48xf32>
    %71 = tpu.matmul %69, %7, %cst_24 {dimension_numbers = #tpu.dot_dimension_numbers<[1], [0], [0], [1], [0, 0, 1, 1], [], []>} : vector<2x16xf32>, vector<16x48xf32>, vector<2x48xf32> -> vector<2x48xf32>
    %72 = vector.broadcast %8 : vector<1x48xf32> to vector<2x48xf32>
    %73 = arith.addf %71, %72 : vector<2x48xf32>
    %74 = vector.extract_strided_slice %70 {offsets = [0, 0], sizes = [2, 16], strides = [1, 1]} : vector<2x48xf32> to vector<2x16xf32>
    %75 = vector.extract_strided_slice %73 {offsets = [0, 0], sizes = [2, 16], strides = [1, 1]} : vector<2x48xf32> to vector<2x16xf32>
    %76 = arith.addf %74, %75 : vector<2x16xf32>
    %77 = arith.negf %76 : vector<2x16xf32>
    %78 = math.exp %77 : vector<2x16xf32>
    %cst_25 = arith.constant 1.000000e+00 : f32
    %79 = vector.broadcast %cst_25 : f32 to vector<2x16xf32>
    %80 = arith.addf %79, %78 : vector<2x16xf32>
    %81 = arith.divf %79, %80 : vector<2x16xf32>
    %82 = vector.extract_strided_slice %70 {offsets = [0, 16], sizes = [2, 16], strides = [1, 1]} : vector<2x48xf32> to vector<2x16xf32>
    %83 = vector.extract_strided_slice %73 {offsets = [0, 16], sizes = [2, 16], strides = [1, 1]} : vector<2x48xf32> to vector<2x16xf32>
    %84 = arith.addf %82, %83 : vector<2x16xf32>
    %85 = arith.negf %84 : vector<2x16xf32>
    %86 = math.exp %85 : vector<2x16xf32>
    %cst_26 = arith.constant 1.000000e+00 : f32
    %87 = vector.broadcast %cst_26 : f32 to vector<2x16xf32>
    %88 = arith.addf %87, %86 : vector<2x16xf32>
    %89 = arith.divf %87, %88 : vector<2x16xf32>
    %90 = vector.extract_strided_slice %70 {offsets = [0, 32], sizes = [2, 16], strides = [1, 1]} : vector<2x48xf32> to vector<2x16xf32>
    %91 = vector.extract_strided_slice %73 {offsets = [0, 32], sizes = [2, 16], strides = [1, 1]} : vector<2x48xf32> to vector<2x16xf32>
    %92 = arith.mulf %81, %91 : vector<2x16xf32>
    %93 = arith.addf %90, %92 : vector<2x16xf32>
    %94 = math.tanh %93 : vector<2x16xf32>
    %cst_27 = arith.constant 1.000000e+00 : f32
    %95 = vector.broadcast %cst_27 : f32 to vector<2x16xf32>
    %96 = arith.subf %95, %89 : vector<2x16xf32>
    %97 = arith.mulf %96, %94 : vector<2x16xf32>
    %98 = arith.mulf %89, %69 : vector<2x16xf32>
    %99 = arith.addf %97, %98 : vector<2x16xf32>
    %c3 = arith.constant 3 : index
    %c0_28 = arith.constant 0 : index
    %100 = tpu.strided_load %arg18[%c3, %c0_28] {strides = array<i32: 8, 1>} : memref<16x48xf32, #tpu.memory_space<vmem>>, vector<2x48xf32>
    %cst_29 = arith.constant dense<0.000000e+00> : vector<2x48xf32>
    %101 = tpu.matmul %99, %7, %cst_29 {dimension_numbers = #tpu.dot_dimension_numbers<[1], [0], [0], [1], [0, 0, 1, 1], [], []>} : vector<2x16xf32>, vector<16x48xf32>, vector<2x48xf32> -> vector<2x48xf32>
    %102 = vector.broadcast %8 : vector<1x48xf32> to vector<2x48xf32>
    %103 = arith.addf %101, %102 : vector<2x48xf32>
    %104 = vector.extract_strided_slice %100 {offsets = [0, 0], sizes = [2, 16], strides = [1, 1]} : vector<2x48xf32> to vector<2x16xf32>
    %105 = vector.extract_strided_slice %103 {offsets = [0, 0], sizes = [2, 16], strides = [1, 1]} : vector<2x48xf32> to vector<2x16xf32>
    %106 = arith.addf %104, %105 : vector<2x16xf32>
    %107 = arith.negf %106 : vector<2x16xf32>
    %108 = math.exp %107 : vector<2x16xf32>
    %cst_30 = arith.constant 1.000000e+00 : f32
    %109 = vector.broadcast %cst_30 : f32 to vector<2x16xf32>
    %110 = arith.addf %109, %108 : vector<2x16xf32>
    %111 = arith.divf %109, %110 : vector<2x16xf32>
    %112 = vector.extract_strided_slice %100 {offsets = [0, 16], sizes = [2, 16], strides = [1, 1]} : vector<2x48xf32> to vector<2x16xf32>
    %113 = vector.extract_strided_slice %103 {offsets = [0, 16], sizes = [2, 16], strides = [1, 1]} : vector<2x48xf32> to vector<2x16xf32>
    %114 = arith.addf %112, %113 : vector<2x16xf32>
    %115 = arith.negf %114 : vector<2x16xf32>
    %116 = math.exp %115 : vector<2x16xf32>
    %cst_31 = arith.constant 1.000000e+00 : f32
    %117 = vector.broadcast %cst_31 : f32 to vector<2x16xf32>
    %118 = arith.addf %117, %116 : vector<2x16xf32>
    %119 = arith.divf %117, %118 : vector<2x16xf32>
    %120 = vector.extract_strided_slice %100 {offsets = [0, 32], sizes = [2, 16], strides = [1, 1]} : vector<2x48xf32> to vector<2x16xf32>
    %121 = vector.extract_strided_slice %103 {offsets = [0, 32], sizes = [2, 16], strides = [1, 1]} : vector<2x48xf32> to vector<2x16xf32>
    %122 = arith.mulf %111, %121 : vector<2x16xf32>
    %123 = arith.addf %120, %122 : vector<2x16xf32>
    %124 = math.tanh %123 : vector<2x16xf32>
    %cst_32 = arith.constant 1.000000e+00 : f32
    %125 = vector.broadcast %cst_32 : f32 to vector<2x16xf32>
    %126 = arith.subf %125, %119 : vector<2x16xf32>
    %127 = arith.mulf %126, %124 : vector<2x16xf32>
    %128 = arith.mulf %119, %99 : vector<2x16xf32>
    %129 = arith.addf %127, %128 : vector<2x16xf32>
    %c4 = arith.constant 4 : index
    %c0_33 = arith.constant 0 : index
    %130 = tpu.strided_load %arg18[%c4, %c0_33] {strides = array<i32: 8, 1>} : memref<16x48xf32, #tpu.memory_space<vmem>>, vector<2x48xf32>
    %cst_34 = arith.constant dense<0.000000e+00> : vector<2x48xf32>
    %131 = tpu.matmul %129, %7, %cst_34 {dimension_numbers = #tpu.dot_dimension_numbers<[1], [0], [0], [1], [0, 0, 1, 1], [], []>} : vector<2x16xf32>, vector<16x48xf32>, vector<2x48xf32> -> vector<2x48xf32>
    %132 = vector.broadcast %8 : vector<1x48xf32> to vector<2x48xf32>
    %133 = arith.addf %131, %132 : vector<2x48xf32>
    %134 = vector.extract_strided_slice %130 {offsets = [0, 0], sizes = [2, 16], strides = [1, 1]} : vector<2x48xf32> to vector<2x16xf32>
    %135 = vector.extract_strided_slice %133 {offsets = [0, 0], sizes = [2, 16], strides = [1, 1]} : vector<2x48xf32> to vector<2x16xf32>
    %136 = arith.addf %134, %135 : vector<2x16xf32>
    %137 = arith.negf %136 : vector<2x16xf32>
    %138 = math.exp %137 : vector<2x16xf32>
    %cst_35 = arith.constant 1.000000e+00 : f32
    %139 = vector.broadcast %cst_35 : f32 to vector<2x16xf32>
    %140 = arith.addf %139, %138 : vector<2x16xf32>
    %141 = arith.divf %139, %140 : vector<2x16xf32>
    %142 = vector.extract_strided_slice %130 {offsets = [0, 16], sizes = [2, 16], strides = [1, 1]} : vector<2x48xf32> to vector<2x16xf32>
    %143 = vector.extract_strided_slice %133 {offsets = [0, 16], sizes = [2, 16], strides = [1, 1]} : vector<2x48xf32> to vector<2x16xf32>
    %144 = arith.addf %142, %143 : vector<2x16xf32>
    %145 = arith.negf %144 : vector<2x16xf32>
    %146 = math.exp %145 : vector<2x16xf32>
    %cst_36 = arith.constant 1.000000e+00 : f32
    %147 = vector.broadcast %cst_36 : f32 to vector<2x16xf32>
    %148 = arith.addf %147, %146 : vector<2x16xf32>
    %149 = arith.divf %147, %148 : vector<2x16xf32>
    %150 = vector.extract_strided_slice %130 {offsets = [0, 32], sizes = [2, 16], strides = [1, 1]} : vector<2x48xf32> to vector<2x16xf32>
    %151 = vector.extract_strided_slice %133 {offsets = [0, 32], sizes = [2, 16], strides = [1, 1]} : vector<2x48xf32> to vector<2x16xf32>
    %152 = arith.mulf %141, %151 : vector<2x16xf32>
    %153 = arith.addf %150, %152 : vector<2x16xf32>
    %154 = math.tanh %153 : vector<2x16xf32>
    %cst_37 = arith.constant 1.000000e+00 : f32
    %155 = vector.broadcast %cst_37 : f32 to vector<2x16xf32>
    %156 = arith.subf %155, %149 : vector<2x16xf32>
    %157 = arith.mulf %156, %154 : vector<2x16xf32>
    %158 = arith.mulf %149, %129 : vector<2x16xf32>
    %159 = arith.addf %157, %158 : vector<2x16xf32>
    %c5 = arith.constant 5 : index
    %c0_38 = arith.constant 0 : index
    %160 = tpu.strided_load %arg18[%c5, %c0_38] {strides = array<i32: 8, 1>} : memref<16x48xf32, #tpu.memory_space<vmem>>, vector<2x48xf32>
    %cst_39 = arith.constant dense<0.000000e+00> : vector<2x48xf32>
    %161 = tpu.matmul %159, %7, %cst_39 {dimension_numbers = #tpu.dot_dimension_numbers<[1], [0], [0], [1], [0, 0, 1, 1], [], []>} : vector<2x16xf32>, vector<16x48xf32>, vector<2x48xf32> -> vector<2x48xf32>
    %162 = vector.broadcast %8 : vector<1x48xf32> to vector<2x48xf32>
    %163 = arith.addf %161, %162 : vector<2x48xf32>
    %164 = vector.extract_strided_slice %160 {offsets = [0, 0], sizes = [2, 16], strides = [1, 1]} : vector<2x48xf32> to vector<2x16xf32>
    %165 = vector.extract_strided_slice %163 {offsets = [0, 0], sizes = [2, 16], strides = [1, 1]} : vector<2x48xf32> to vector<2x16xf32>
    %166 = arith.addf %164, %165 : vector<2x16xf32>
    %167 = arith.negf %166 : vector<2x16xf32>
    %168 = math.exp %167 : vector<2x16xf32>
    %cst_40 = arith.constant 1.000000e+00 : f32
    %169 = vector.broadcast %cst_40 : f32 to vector<2x16xf32>
    %170 = arith.addf %169, %168 : vector<2x16xf32>
    %171 = arith.divf %169, %170 : vector<2x16xf32>
    %172 = vector.extract_strided_slice %160 {offsets = [0, 16], sizes = [2, 16], strides = [1, 1]} : vector<2x48xf32> to vector<2x16xf32>
    %173 = vector.extract_strided_slice %163 {offsets = [0, 16], sizes = [2, 16], strides = [1, 1]} : vector<2x48xf32> to vector<2x16xf32>
    %174 = arith.addf %172, %173 : vector<2x16xf32>
    %175 = arith.negf %174 : vector<2x16xf32>
    %176 = math.exp %175 : vector<2x16xf32>
    %cst_41 = arith.constant 1.000000e+00 : f32
    %177 = vector.broadcast %cst_41 : f32 to vector<2x16xf32>
    %178 = arith.addf %177, %176 : vector<2x16xf32>
    %179 = arith.divf %177, %178 : vector<2x16xf32>
    %180 = vector.extract_strided_slice %160 {offsets = [0, 32], sizes = [2, 16], strides = [1, 1]} : vector<2x48xf32> to vector<2x16xf32>
    %181 = vector.extract_strided_slice %163 {offsets = [0, 32], sizes = [2, 16], strides = [1, 1]} : vector<2x48xf32> to vector<2x16xf32>
    %182 = arith.mulf %171, %181 : vector<2x16xf32>
    %183 = arith.addf %180, %182 : vector<2x16xf32>
    %184 = math.tanh %183 : vector<2x16xf32>
    %cst_42 = arith.constant 1.000000e+00 : f32
    %185 = vector.broadcast %cst_42 : f32 to vector<2x16xf32>
    %186 = arith.subf %185, %179 : vector<2x16xf32>
    %187 = arith.mulf %186, %184 : vector<2x16xf32>
    %188 = arith.mulf %179, %159 : vector<2x16xf32>
    %189 = arith.addf %187, %188 : vector<2x16xf32>
    %c6 = arith.constant 6 : index
    %c0_43 = arith.constant 0 : index
    %190 = tpu.strided_load %arg18[%c6, %c0_43] {strides = array<i32: 8, 1>} : memref<16x48xf32, #tpu.memory_space<vmem>>, vector<2x48xf32>
    %cst_44 = arith.constant dense<0.000000e+00> : vector<2x48xf32>
    %191 = tpu.matmul %189, %7, %cst_44 {dimension_numbers = #tpu.dot_dimension_numbers<[1], [0], [0], [1], [0, 0, 1, 1], [], []>} : vector<2x16xf32>, vector<16x48xf32>, vector<2x48xf32> -> vector<2x48xf32>
    %192 = vector.broadcast %8 : vector<1x48xf32> to vector<2x48xf32>
    %193 = arith.addf %191, %192 : vector<2x48xf32>
    %194 = vector.extract_strided_slice %190 {offsets = [0, 0], sizes = [2, 16], strides = [1, 1]} : vector<2x48xf32> to vector<2x16xf32>
    %195 = vector.extract_strided_slice %193 {offsets = [0, 0], sizes = [2, 16], strides = [1, 1]} : vector<2x48xf32> to vector<2x16xf32>
    %196 = arith.addf %194, %195 : vector<2x16xf32>
    %197 = arith.negf %196 : vector<2x16xf32>
    %198 = math.exp %197 : vector<2x16xf32>
    %cst_45 = arith.constant 1.000000e+00 : f32
    %199 = vector.broadcast %cst_45 : f32 to vector<2x16xf32>
    %200 = arith.addf %199, %198 : vector<2x16xf32>
    %201 = arith.divf %199, %200 : vector<2x16xf32>
    %202 = vector.extract_strided_slice %190 {offsets = [0, 16], sizes = [2, 16], strides = [1, 1]} : vector<2x48xf32> to vector<2x16xf32>
    %203 = vector.extract_strided_slice %193 {offsets = [0, 16], sizes = [2, 16], strides = [1, 1]} : vector<2x48xf32> to vector<2x16xf32>
    %204 = arith.addf %202, %203 : vector<2x16xf32>
    %205 = arith.negf %204 : vector<2x16xf32>
    %206 = math.exp %205 : vector<2x16xf32>
    %cst_46 = arith.constant 1.000000e+00 : f32
    %207 = vector.broadcast %cst_46 : f32 to vector<2x16xf32>
    %208 = arith.addf %207, %206 : vector<2x16xf32>
    %209 = arith.divf %207, %208 : vector<2x16xf32>
    %210 = vector.extract_strided_slice %190 {offsets = [0, 32], sizes = [2, 16], strides = [1, 1]} : vector<2x48xf32> to vector<2x16xf32>
    %211 = vector.extract_strided_slice %193 {offsets = [0, 32], sizes = [2, 16], strides = [1, 1]} : vector<2x48xf32> to vector<2x16xf32>
    %212 = arith.mulf %201, %211 : vector<2x16xf32>
    %213 = arith.addf %210, %212 : vector<2x16xf32>
    %214 = math.tanh %213 : vector<2x16xf32>
    %cst_47 = arith.constant 1.000000e+00 : f32
    %215 = vector.broadcast %cst_47 : f32 to vector<2x16xf32>
    %216 = arith.subf %215, %209 : vector<2x16xf32>
    %217 = arith.mulf %216, %214 : vector<2x16xf32>
    %218 = arith.mulf %209, %189 : vector<2x16xf32>
    %219 = arith.addf %217, %218 : vector<2x16xf32>
    %c7 = arith.constant 7 : index
    %c0_48 = arith.constant 0 : index
    %220 = tpu.strided_load %arg18[%c7, %c0_48] {strides = array<i32: 8, 1>} : memref<16x48xf32, #tpu.memory_space<vmem>>, vector<2x48xf32>
    %cst_49 = arith.constant dense<0.000000e+00> : vector<2x48xf32>
    %221 = tpu.matmul %219, %7, %cst_49 {dimension_numbers = #tpu.dot_dimension_numbers<[1], [0], [0], [1], [0, 0, 1, 1], [], []>} : vector<2x16xf32>, vector<16x48xf32>, vector<2x48xf32> -> vector<2x48xf32>
    %222 = vector.broadcast %8 : vector<1x48xf32> to vector<2x48xf32>
    %223 = arith.addf %221, %222 : vector<2x48xf32>
    %224 = vector.extract_strided_slice %220 {offsets = [0, 0], sizes = [2, 16], strides = [1, 1]} : vector<2x48xf32> to vector<2x16xf32>
    %225 = vector.extract_strided_slice %223 {offsets = [0, 0], sizes = [2, 16], strides = [1, 1]} : vector<2x48xf32> to vector<2x16xf32>
    %226 = arith.addf %224, %225 : vector<2x16xf32>
    %227 = arith.negf %226 : vector<2x16xf32>
    %228 = math.exp %227 : vector<2x16xf32>
    %cst_50 = arith.constant 1.000000e+00 : f32
    %229 = vector.broadcast %cst_50 : f32 to vector<2x16xf32>
    %230 = arith.addf %229, %228 : vector<2x16xf32>
    %231 = arith.divf %229, %230 : vector<2x16xf32>
    %232 = vector.extract_strided_slice %220 {offsets = [0, 16], sizes = [2, 16], strides = [1, 1]} : vector<2x48xf32> to vector<2x16xf32>
    %233 = vector.extract_strided_slice %223 {offsets = [0, 16], sizes = [2, 16], strides = [1, 1]} : vector<2x48xf32> to vector<2x16xf32>
    %234 = arith.addf %232, %233 : vector<2x16xf32>
    %235 = arith.negf %234 : vector<2x16xf32>
    %236 = math.exp %235 : vector<2x16xf32>
    %cst_51 = arith.constant 1.000000e+00 : f32
    %237 = vector.broadcast %cst_51 : f32 to vector<2x16xf32>
    %238 = arith.addf %237, %236 : vector<2x16xf32>
    %239 = arith.divf %237, %238 : vector<2x16xf32>
    %240 = vector.extract_strided_slice %220 {offsets = [0, 32], sizes = [2, 16], strides = [1, 1]} : vector<2x48xf32> to vector<2x16xf32>
    %241 = vector.extract_strided_slice %223 {offsets = [0, 32], sizes = [2, 16], strides = [1, 1]} : vector<2x48xf32> to vector<2x16xf32>
    %242 = arith.mulf %231, %241 : vector<2x16xf32>
    %243 = arith.addf %240, %242 : vector<2x16xf32>
    %244 = math.tanh %243 : vector<2x16xf32>
    %cst_52 = arith.constant 1.000000e+00 : f32
    %245 = vector.broadcast %cst_52 : f32 to vector<2x16xf32>
    %246 = arith.subf %245, %239 : vector<2x16xf32>
    %247 = arith.mulf %246, %244 : vector<2x16xf32>
    %248 = arith.mulf %239, %219 : vector<2x16xf32>
    %249 = arith.addf %247, %248 : vector<2x16xf32>
    %c0_53 = arith.constant 0 : index
    %c0_54 = arith.constant 0 : index
    %250 = vector.load %arg0[%c0_53, %c0_54] : memref<24x1xi32, #tpu.memory_space<vmem>>, vector<24x1xi32>
    %251 = tpu.iota {dimensions = array<i32: 1>} : vector<24x50xi32>
    %252 = vector.broadcast %250 : vector<24x1xi32> to vector<24x50xi32>
    %253 = arith.cmpi eq, %251, %252 : vector<24x50xi32>
    %254 = arith.extui %253 : vector<24x50xi1> to vector<24x50xi32>
    %255 = arith.sitofp %254 : vector<24x50xi32> to vector<24x50xf32>
    %c0_55 = arith.constant 0 : index
    %c0_56 = arith.constant 0 : index
    %256 = vector.load %arg3[%c0_55, %c0_56] : memref<50x16xf32, #tpu.memory_space<vmem>>, vector<50x16xf32>
    %cst_57 = arith.constant dense<0.000000e+00> : vector<24x16xf32>
    %257 = tpu.matmul %255, %256, %cst_57 {dimension_numbers = #tpu.dot_dimension_numbers<[1], [0], [0], [1], [0, 0, 1, 1], [], []>} : vector<24x50xf32>, vector<50x16xf32>, vector<24x16xf32> -> vector<24x16xf32>
    %c0_58 = arith.constant 0 : index
    %c0_59 = arith.constant 0 : index
    %258 = vector.load %arg4[%c0_58, %c0_59] : memref<32x24xf32, #tpu.memory_space<vmem>>, vector<32x24xf32>
    %cst_60 = arith.constant dense<0.000000e+00> : vector<32x16xf32>
    %259 = tpu.matmul %258, %257, %cst_60 {dimension_numbers = #tpu.dot_dimension_numbers<[1], [0], [0], [1], [0, 0, 1, 1], [], []>} : vector<32x24xf32>, vector<24x16xf32>, vector<32x16xf32> -> vector<32x16xf32>
    %c0_61 = arith.constant 0 : index
    %c0_62 = arith.constant 0 : index
    %c0_63 = arith.constant 0 : index
    %260 = vector.load %arg9[%c0_61, %c0_62, %c0_63] : memref<4x16x24xf32, #tpu.memory_space<vmem>>, vector<1x16x24xf32>
    %261 = vector.shape_cast %260 : vector<1x16x24xf32> to vector<16x24xf32>
    %cst_64 = arith.constant dense<0.000000e+00> : vector<32x24xf32>
    %262 = tpu.matmul %259, %261, %cst_64 {dimension_numbers = #tpu.dot_dimension_numbers<[1], [0], [0], [1], [0, 0, 1, 1], [], []>} : vector<32x16xf32>, vector<16x24xf32>, vector<32x24xf32> -> vector<32x24xf32>
    %c0_65 = arith.constant 0 : index
    %c0_66 = arith.constant 0 : index
    %263 = vector.load %arg10[%c0_65, %c0_66] : memref<1x24xf32, #tpu.memory_space<vmem>>, vector<1x24xf32>
    %264 = vector.broadcast %263 : vector<1x24xf32> to vector<32x24xf32>
    %265 = arith.addf %262, %264 : vector<32x24xf32>
    %c31_i32 = arith.constant 31 : i32
    %266 = tpu.dynamic_rotate %259 by %c31_i32 dim 0 : vector<32x16xf32>, i32 -> vector<32x16xf32>
    %c1_67 = arith.constant 1 : index
    %c0_68 = arith.constant 0 : index
    %c0_69 = arith.constant 0 : index
    %267 = vector.load %arg9[%c1_67, %c0_68, %c0_69] : memref<4x16x24xf32, #tpu.memory_space<vmem>>, vector<1x16x24xf32>
    %268 = vector.shape_cast %267 : vector<1x16x24xf32> to vector<16x24xf32>
    %cst_70 = arith.constant dense<0.000000e+00> : vector<32x24xf32>
    %269 = tpu.matmul %266, %268, %cst_70 {dimension_numbers = #tpu.dot_dimension_numbers<[1], [0], [0], [1], [0, 0, 1, 1], [], []>} : vector<32x16xf32>, vector<16x24xf32>, vector<32x24xf32> -> vector<32x24xf32>
    %270 = arith.addf %265, %269 : vector<32x24xf32>
    %c30_i32 = arith.constant 30 : i32
    %271 = tpu.dynamic_rotate %259 by %c30_i32 dim 0 : vector<32x16xf32>, i32 -> vector<32x16xf32>
    %c2_71 = arith.constant 2 : index
    %c0_72 = arith.constant 0 : index
    %c0_73 = arith.constant 0 : index
    %272 = vector.load %arg9[%c2_71, %c0_72, %c0_73] : memref<4x16x24xf32, #tpu.memory_space<vmem>>, vector<1x16x24xf32>
    %273 = vector.shape_cast %272 : vector<1x16x24xf32> to vector<16x24xf32>
    %cst_74 = arith.constant dense<0.000000e+00> : vector<32x24xf32>
    %274 = tpu.matmul %271, %273, %cst_74 {dimension_numbers = #tpu.dot_dimension_numbers<[1], [0], [0], [1], [0, 0, 1, 1], [], []>} : vector<32x16xf32>, vector<16x24xf32>, vector<32x24xf32> -> vector<32x24xf32>
    %275 = arith.addf %270, %274 : vector<32x24xf32>
    %c29_i32 = arith.constant 29 : i32
    %276 = tpu.dynamic_rotate %259 by %c29_i32 dim 0 : vector<32x16xf32>, i32 -> vector<32x16xf32>
    %c3_75 = arith.constant 3 : index
    %c0_76 = arith.constant 0 : index
    %c0_77 = arith.constant 0 : index
    %277 = vector.load %arg9[%c3_75, %c0_76, %c0_77] : memref<4x16x24xf32, #tpu.memory_space<vmem>>, vector<1x16x24xf32>
    %278 = vector.shape_cast %277 : vector<1x16x24xf32> to vector<16x24xf32>
    %cst_78 = arith.constant dense<0.000000e+00> : vector<32x24xf32>
    %279 = tpu.matmul %276, %278, %cst_78 {dimension_numbers = #tpu.dot_dimension_numbers<[1], [0], [0], [1], [0, 0, 1, 1], [], []>} : vector<32x16xf32>, vector<16x24xf32>, vector<32x24xf32> -> vector<32x24xf32>
    %280 = arith.addf %275, %279 : vector<32x24xf32>
    %cst_79 = arith.constant 0.000000e+00 : f32
    %281 = vector.broadcast %cst_79 : f32 to vector<32x24xf32>
    %282 = arith.maximumf %280, %281 : vector<32x24xf32>
    %283 = vector.shape_cast %282 : vector<32x24xf32> to vector<2x16x24xf32>
    %c0_80 = arith.constant 0 : index
    %c0_81 = arith.constant 0 : index
    %284 = vector.load %arg11[%c0_80, %c0_81] : memref<16x24xf32, #tpu.memory_space<vmem>>, vector<16x24xf32>
    %285 = vector.shape_cast %284 : vector<16x24xf32> to vector<1x16x24xf32>
    %286 = vector.broadcast %285 : vector<1x16x24xf32> to vector<2x16x24xf32>
    %287 = arith.addf %283, %286 : vector<2x16x24xf32>
    %cst_82 = arith.constant dense<0xFF800000> : vector<2x24xf32>
    %288 = vector.multi_reduction <maximumf>, %287, %cst_82 [1] : vector<2x16x24xf32> to vector<2x24xf32>
    %c0_83 = arith.constant 0 : index
    %c0_84 = arith.constant 0 : index
    %289 = vector.load %arg2[%c0_83, %c0_84] : memref<2x6xf32, #tpu.memory_space<vmem>>, vector<2x6xf32>
    %290 = tpu.concatenate %249, %288, %289 in 1 : vector<2x16xf32>, vector<2x24xf32>, vector<2x6xf32> -> vector<2x46xf32>
    %c0_85 = arith.constant 0 : index
    %c0_86 = arith.constant 0 : index
    %291 = vector.load %arg17[%c0_85, %c0_86] : memref<2x46xf32, #tpu.memory_space<vmem>>, vector<2x46xf32>
    tpu.vector_store %arg17[%c0_85, %c0_86], %290 {strides = array<i32>} : memref<2x46xf32, #tpu.memory_space<vmem>>, vector<2x46xf32>,
    %c0_87 = arith.constant 0 : index
    %c0_88 = arith.constant 0 : index
    %292 = vector.load %arg12[%c0_87, %c0_88] : memref<46x32xf32, #tpu.memory_space<vmem>>, vector<46x32xf32>
    %cst_89 = arith.constant dense<0.000000e+00> : vector<2x32xf32>
    %293 = tpu.matmul %290, %292, %cst_89 {dimension_numbers = #tpu.dot_dimension_numbers<[1], [0], [0], [1], [0, 0, 1, 1], [], []>} : vector<2x46xf32>, vector<46x32xf32>, vector<2x32xf32> -> vector<2x32xf32>
    %c0_90 = arith.constant 0 : index
    %c0_91 = arith.constant 0 : index
    %294 = vector.load %arg13[%c0_90, %c0_91] : memref<1x32xf32, #tpu.memory_space<vmem>>, vector<1x32xf32>
    %295 = vector.broadcast %294 : vector<1x32xf32> to vector<2x32xf32>
    %296 = arith.addf %293, %295 : vector<2x32xf32>
    %cst_92 = arith.constant 0.000000e+00 : f32
    %297 = vector.broadcast %cst_92 : f32 to vector<2x32xf32>
    %298 = arith.maximumf %296, %297 : vector<2x32xf32>
    %c0_93 = arith.constant 0 : index
    %c0_94 = arith.constant 0 : index
    %299 = vector.load %arg14[%c0_93, %c0_94] : memref<32x5xf32, #tpu.memory_space<vmem>>, vector<32x5xf32>
    %cst_95 = arith.constant dense<0.000000e+00> : vector<2x5xf32>
    %300 = tpu.matmul %298, %299, %cst_95 {dimension_numbers = #tpu.dot_dimension_numbers<[1], [0], [0], [1], [0, 0, 1, 1], [], []>} : vector<2x32xf32>, vector<32x5xf32>, vector<2x5xf32> -> vector<2x5xf32>
    %c0_96 = arith.constant 0 : index
    %c0_97 = arith.constant 0 : index
    %301 = vector.load %arg15[%c0_96, %c0_97] : memref<1x5xf32, #tpu.memory_space<vmem>>, vector<1x5xf32>
    %302 = vector.broadcast %301 : vector<1x5xf32> to vector<2x5xf32>
    %303 = arith.addf %300, %302 : vector<2x5xf32>
    %c0_98 = arith.constant 0 : index
    %c0_99 = arith.constant 0 : index
    %304 = vector.load %arg16[%c0_98, %c0_99] : memref<2x5xf32, #tpu.memory_space<vmem>>, vector<2x5xf32>
    tpu.vector_store %arg16[%c0_98, %c0_99], %303 {strides = array<i32>} : memref<2x5xf32, #tpu.memory_space<vmem>>, vector<2x5xf32>,
    return
  }
}

</mosaic_0001>

<bundles_post_ra>
// kernel: forward.1
= control target key start
LH: loop header
LB: loop body
LE: loop exit
PB: predicated region body
PF: predicated region fallthrough
CT: control target
= control target key end

     0   :  { %s2752_s0 = inlined_call_operand.vmem [shape: s32[24,1], index: 0, kind: input, shape index: {}]   ;;  %s2753_s1 = inlined_call_operand.vmem [shape: f32[16,8], index: 1, kind: input, shape index: {}]   ;;  %s2754_s2 = inlined_call_operand.vmem [shape: f32[2,6], index: 2, kind: input, shape index: {}]   ;;  %s2755_s3 = inlined_call_operand.vmem [shape: f32[50,16], index: 3, kind: input, shape index: {}]   ;;  %s2756_s4 = inlined_call_operand.vmem [shape: f32[32,24], index: 4, kind: input, shape index: {}]   ;;  %s2757_s5 = inlined_call_operand.vmem [shape: f32[8,48], index: 5, kind: input, shape index: {}]   ;;  %s2758_s6 = inlined_call_operand.vmem [shape: f32[1,48], index: 6, kind: input, shape index: {}]   ;;  %s2759_s7 = inlined_call_operand.vmem [shape: f32[16,48], index: 7, kind: input, shape index: {}]   ;;  %s2760_s8 = inlined_call_operand.vmem [shape: f32[1,48], index: 8, kind: input, shape index: {}]   ;;  %s2761_s9 = inlined_call_operand.vmem [shape: f32[4,16,24], index: 9, kind: input, shape index: {}]   ;;  %s2762_s10 = inlined_call_operand.vmem [shape: f32[1,24], index: 10, kind: input, shape index: {}]   ;;  %s2763_s11 = inlined_call_operand.vmem [shape: f32[16,24], index: 11, kind: input, shape index: {}]   ;;  %s2764_s12 = inlined_call_operand.vmem [shape: f32[46,32], index: 12, kind: input, shape index: {}]   ;;  %s2765_s13 = inlined_call_operand.vmem [shape: f32[1,32], index: 13, kind: input, shape index: {}]   ;;  %s2766_s14 = inlined_call_operand.vmem [shape: f32[32,5], index: 14, kind: input, shape index: {}]   ;;  %s2767_s15 = inlined_call_operand.vmem [shape: f32[1,5], index: 15, kind: input, shape index: {}]   ;;  %s2768_s16 = inlined_call_operand.hbm [shape: f32[2,5], index: 16, kind: output, shape index: {0}]   ;;  %s2769_s17 = inlined_call_operand.hbm [shape: f32[2,46], index: 17, kind: output, shape index: {1}]  }
   0x1   :  { %2772 = sst [smem:[#allocation9_spill]] %s2752_s0 }
   0x2   :  { %2773 = sst [smem:[#allocation10_spill]] %s2753_s1 }
   0x3   :  { %23 = vsyncpa [#allocation4], 0  ;;  %v59_v0 = vld [vmem:[%s2757_s5] sm:$0xff]  ;;  %s2774_s28 = sld [smem:[#allocation10_spill]]  ;;  %vm67_vm0 = vcmask 64512   ;;  %v2425_v2 = vld [vmem:[%s2759_s7 + $0x8] sm:$0xff] }
   0x4   :  { %2050 = vmatprep.subr.mxu0 %v59_v0  ;;  %v2316_v3 = vmov 0.0  }
   0x5   :  { %2055 = vmatprep.subr.mxu1 %v2316_v3 }
   0x9   :  { %v57_v1 = vld [vmem:[%s2774_s28] sm:$0xff]  ;;  %v58_v4 = vld [vmem:[%s2774_s28 + $0x8] sm:$0xff] }
   0xa   :  { %24 = vsyncpa [#allocation6], 0  ;;  %2051 = vmatpush3.msra.mxu0 %v59_v0  ;;  %2052 = vmatprep.mubr.msk.f32.mxu0 %vm67_vm0, %v57_v1  ;;  %v2434_v5 = vld [vmem:[%s2759_s7] sm:$0xff]  ;;  %vm2317_vm1 = vmmov 0   ;;  %vm149_vm2 = vcmask 392192   ;;  %s2318_s22 = smov 96  }
   0xb   :  { %2056 = vmatpush3.msra.mxu1 %v2425_v2  ;;  %2053 = vmatmul.mubr.msk.f32.vlgmr.msra.gmra.mxu0 %vm67_vm0, %v58_v4  ;;  %v1912_v6 = vld [vmem:[%s2758_s6] ss:$0 sm:$0xff]  ;;  %s2319_s6 = smov 32   ;;  %vm162_vm3 = vcmask 130048   ;;  %s2775_s25 = sld [smem:[#allocation9_spill]]  ;;  %vm1023_vm4 = vcmask 1041408  }
   0xc   :  { %2057 = vmatprep.subr.mxu1 %v2316_v3  ;;  %2059 = vmatprep.mubr.msk.f32.mxu1 %vm2317_vm1, %v2316_v3  ;;  %v2462_v9 = vld [vmem:[%s2760_s8] ss:$0 sm:$0xff]  ;;  %s2320_s8 = smov 112   ;;  %vm1013_vm6 = vcmask 408576   ;;  %vm1111_vm9 = vcmask 195584   ;;  %vm1722_vm13 = vcmask 1045504  }
   0xd   :  { %2058 = vmatpush3.msra.mxu1 %v2434_v5  ;;  %2062 = vmatprep.subr.mxu0 %v2316_v3  ;;  %vm1691_vm14 = vcmask 1041409   ;;  %s2322_s24 = smov 16   ;;  %s2323_s18 = smov 40   ;;  %vm1701_vm15 = vcmask 326656   ;;  %vm1718_vm0 = vcmask 375808  }
   0xe   :  { %2060 = vmatmul.mubr.f32.vlgmr.msra.gmra.mxu1 %v2316_v3  ;;  %2063 = vmatpush3.msra.mxu0 %v2425_v2 }
   0xf   :  { %2064 = vmatprep.subr.mxu0 %v2316_v3  ;;  %2066 = vmatprep.mubr.msk.f32.mxu0 %vm2317_vm1, %v2316_v3 }
  0x10   :  { %2065 = vmatpush3.msra.mxu0 %v2434_v5  ;;  %2069 = vmatprep.subr.mxu1 %v2316_v3 }
  0x11   :  { %2070 = vmatpush3.msra.mxu1 %v2425_v2  ;;  %2073 = vmatprep.mubr.msk.f32.mxu1 %vm2317_vm1, %v2316_v3 }
  0x12   :  { %2071 = vmatprep.subr.mxu1 %v2316_v3  ;;  %2076 = vmatprep.subr.mxu0 %v2316_v3 }
  0x13   :  { %2072 = vmatpush3.msra.mxu1 %v2434_v5 }
  0x14   :  { %2083 = vmatprep.subr.mxu1 %v2316_v3 }
  0xcb   :  { %v2054_v7 = vpop.f32.mrf.mxu0 }
  0xcc   :  { %v146_v8 = vadd.f32 %v2054_v7, %v1912_v6 }
  0xcd   :  { %v140_v10 = vpop.f32.mrf.mxu0 }
  0xce   :  { %151 = vst.msk [vmem:[#allocation2 + $0x8] sm:$0xff] %vm149_vm2, %v146_v8  ;;  %v141_v11 = vadd.f32 %v1912_v6, %v140_v10  ;;  %v232_v12 = vpop.f32.mrf.mxu1 }
  0xcf   :  { %v233_v13 = vadd.f32 %v2462_v9, %v232_v12 }
  0xd0   :  { %150 = vst.msk [vmem:[#allocation2] sm:$0xff] %vm149_vm2, %v141_v11  ;;  %v2061_v14 = vpop.f32.mrf.mxu1  ;;  %vm1808_vm2 = vcmask 261120  }
  0xd1   :  { %244 = vrot.lane.b32.xlu0 %v233_v13, %s2318_s22 }
  0xd7   :  { %v155_v15 = vld [vmem:[#allocation2] ss:$8 sm:$0x3]  ;;  %v263_v35 = vld [vmem:[#allocation2 + $0x1] ss:$8 sm:$0x3] }
  0xd8   :  { %v236_v16 = vadd.f32 %v233_v13, %v155_v15  ;;  %v366_v55 = vld [vmem:[#allocation2 + $0x2] ss:$8 sm:$0x3] }
  0xda   :  { %v1916_v17 = vmul.f32 -1.442695, %v236_v16 }
  0xdc   :  { %2224 = vpow2.f32 %v1916_v17 }
  0xe9   :  { %v2225_v18 = vpop.eup %2224 }
  0xea   :  { %v240_v19 = vadd.f32 1.0, %v2225_v18 }
  0xec   :  { %2226 = vrcp.f32 %v240_v19 }
  0xf9   :  { %v2227_v20 = vpop.eup %2226 }
  0xfa   :  { %v254_v26 = vsub.f32 1.0, %v2227_v20  ;;  %v260_v28 = vmul.f32 0.0, %v2227_v20 }
 0x143   :  { %v245_v21 = vpop.permute.xlu0 %244 }
 0x144   :  { %v247_v22 = vmul.f32 %v2227_v20, %v245_v21 }
 0x146   :  { %249 = vrot.lane.b32.xlu0 %v247_v22, %s2319_s6 }
 0x1b8   :  { %v250_v23 = vpop.permute.xlu0 %249 }
 0x1b9   :  { %v252_v24 = vadd.f32 %v250_v23, %v155_v15  ;;  %v469_v15 = vld [vmem:[#allocation2 + $0x3] ss:$8 sm:$0x3] }
 0x1bb   :  { %2228 = vtanh.f32 %v252_v24 }
 0x1c8   :  { %v2229_v25 = vpop.eup %2228 }
 0x1c9   :  { %256 = vrot.lane.b32.xlu1 %v2229_v25, %s2320_s8 }
 0x23b   :  { %v257_v27 = vpop.permute.xlu1 %256 }
 0x23c   :  { %v259_v29 = vmul.f32 %v257_v27, %v254_v26 }
 0x23e   :  { %v261_v30 = vadd.f32 %v260_v28, %v259_v29 }
 0x240   :  { %265 = vrot.lane.b32.xlu1 %v261_v30, %s2320_s8 }
 0x2b2   :  { %v266_v31 = vpop.permute.xlu1 %265 }
 0x2b3   :  { %2067 = vmatmul.mubr.msk.f32.vlgmr.msra.gmra.mxu0 %vm162_vm3, %v266_v31 }
 0x2b4   :  { %2077 = vmatpush3.msra.mxu0 %v2425_v2  ;;  %2080 = vmatprep.mubr.msk.f32.mxu0 %vm2317_vm1, %v2316_v3 }
 0x2b5   :  { %2078 = vmatprep.subr.mxu0 %v2316_v3 }
 0x2b6   :  { %2079 = vmatpush3.msra.mxu0 %v2434_v5 }
 0x2b7   :  { %2090 = vmatprep.subr.mxu0 %v2316_v3 }
 0x373   :  { %v335_v32 = vpop.f32.mrf.mxu0 }
 0x374   :  { %v336_v33 = vadd.f32 %v2462_v9, %v335_v32 }
 0x375   :  { %v2068_v34 = vpop.f32.mrf.mxu0 }
 0x376   :  { %347 = vrot.lane.b32.xlu0 %v336_v33, %s2318_s22  ;;  %v339_v36 = vadd.f32 %v336_v33, %v263_v35 }
 0x378   :  { %v1918_v37 = vmul.f32 -1.442695, %v339_v36 }
 0x37a   :  { %2230 = vpow2.f32 %v1918_v37 }
 0x387   :  { %v2231_v38 = vpop.eup %2230 }
 0x388   :  { %v343_v39 = vadd.f32 1.0, %v2231_v38 }
 0x38a   :  { %2232 = vrcp.f32 %v343_v39 }
 0x397   :  { %v2233_v40 = vpop.eup %2232 }
 0x398   :  { %v357_v46 = vsub.f32 1.0, %v2233_v40  ;;  %v363_v48 = vmul.f32 %v2233_v40, %v261_v30 }
 0x3e8   :  { %v348_v41 = vpop.permute.xlu0 %347 }
 0x3e9   :  { %v350_v42 = vmul.f32 %v2233_v40, %v348_v41 }
 0x3eb   :  { %352 = vrot.lane.b32.xlu1 %v350_v42, %s2319_s6 }
 0x45d   :  { %v353_v43 = vpop.permute.xlu1 %352 }
 0x45e   :  { %v355_v44 = vadd.f32 %v353_v43, %v263_v35  ;;  %v572_v35 = vld [vmem:[#allocation2 + $0x4] ss:$8 sm:$0x3] }
 0x460   :  { %2234 = vtanh.f32 %v355_v44 }
 0x46d   :  { %v2235_v45 = vpop.eup %2234 }
 0x46e   :  { %359 = vrot.lane.b32.xlu0 %v2235_v45, %s2320_s8 }
 0x4e0   :  { %v360_v47 = vpop.permute.xlu0 %359 }
 0x4e1   :  { %v362_v49 = vmul.f32 %v360_v47, %v357_v46 }
 0x4e3   :  { %v364_v50 = vadd.f32 %v363_v48, %v362_v49 }
 0x4e5   :  { %368 = vrot.lane.b32.xlu1 %v364_v50, %s2320_s8 }
 0x557   :  { %v369_v51 = vpop.permute.xlu1 %368 }
 0x558   :  { %2074 = vmatmul.mubr.msk.f32.vlgmr.msra.gmra.mxu1 %vm162_vm3, %v369_v51 }
 0x559   :  { %2084 = vmatpush3.msra.mxu1 %v2425_v2  ;;  %2087 = vmatprep.mubr.msk.f32.mxu1 %vm2317_vm1, %v2316_v3 }
 0x55a   :  { %2085 = vmatprep.subr.mxu1 %v2316_v3 }
 0x55b   :  { %2086 = vmatpush3.msra.mxu1 %v2434_v5 }
 0x55c   :  { %2097 = vmatprep.subr.mxu1 %v2316_v3 }
 0x618   :  { %v438_v52 = vpop.f32.mrf.mxu1 }
 0x619   :  { %v439_v53 = vadd.f32 %v2462_v9, %v438_v52 }
 0x61a   :  { %v2075_v54 = vpop.f32.mrf.mxu1 }
 0x61b   :  { %450 = vrot.lane.b32.xlu0 %v439_v53, %s2318_s22  ;;  %v442_v56 = vadd.f32 %v439_v53, %v366_v55 }
 0x61d   :  { %v1920_v57 = vmul.f32 -1.442695, %v442_v56 }
 0x61f   :  { %2236 = vpow2.f32 %v1920_v57 }
 0x62c   :  { %v2237_v58 = vpop.eup %2236 }
 0x62d   :  { %v446_v59 = vadd.f32 1.0, %v2237_v58 }
 0x62f   :  { %2238 = vrcp.f32 %v446_v59 }
 0x63c   :  { %v2239_v60 = vpop.eup %2238 }
 0x63d   :  { %v460_v4 = vsub.f32 1.0, %v2239_v60  ;;  %v466_v7 = vmul.f32 %v2239_v60, %v364_v50 }
 0x68d   :  { %v451_v61 = vpop.permute.xlu0 %450 }
 0x68e   :  { %v453_v62 = vmul.f32 %v2239_v60, %v451_v61 }
 0x690   :  { %455 = vrot.lane.b32.xlu1 %v453_v62, %s2319_s6 }
 0x702   :  { %v456_v63 = vpop.permute.xlu1 %455 }
 0x703   :  { %v458_v0 = vadd.f32 %v456_v63, %v366_v55  ;;  %v675_v55 = vld [vmem:[#allocation2 + $0x5] ss:$8 sm:$0x3] }
 0x705   :  { %2240 = vtanh.f32 %v458_v0  ;;  %v983_v0 = vld [vmem:[%s2775_s25] sm:$0xff] }
 0x712   :  { %v2241_v1 = vpop.eup %2240 }
 0x713   :  { %462 = vrot.lane.b32.xlu0 %v2241_v1, %s2320_s8  ;;  %v2321_v1 = vmov 0  }
 0x714   :  { %2222 = vset.pattern.permute.xlu0 %v2321_v1  ;;  %2223 = vset.pattern.permute.xlu1 %v2321_v1 }
 0x785   :  { %v463_v6 = vpop.permute.xlu0 %462 }
 0x786   :  { %v465_v8 = vmul.f32 %v463_v6, %v460_v4 }
 0x788   :  { %v467_v10 = vadd.f32 %v466_v7, %v465_v8 }
 0x78a   :  { %471 = vrot.lane.b32.xlu1 %v467_v10, %s2320_s8 }
 0x7fc   :  { %v472_v11 = vpop.permute.xlu1 %471 }
 0x7fd   :  { %2081 = vmatmul.mubr.msk.f32.vlgmr.msra.gmra.mxu0 %vm162_vm3, %v472_v11 }
 0x7fe   :  { %2091 = vmatpush3.msra.mxu0 %v2425_v2  ;;  %2094 = vmatprep.mubr.msk.f32.mxu0 %vm2317_vm1, %v2316_v3 }
 0x7ff   :  { %2092 = vmatprep.subr.mxu0 %v2316_v3 }
 0x800   :  { %2093 = vmatpush3.msra.mxu0 %v2434_v5 }
 0x801   :  { %2104 = vmatprep.subr.mxu0 %v2316_v3 }
 0x8bd   :  { %v541_v12 = vpop.f32.mrf.mxu0 }
 0x8be   :  { %v542_v13 = vadd.f32 %v2462_v9, %v541_v12  ;;  %v984_v12 = vld [vmem:[%s2775_s25 + $0x8] sm:$0xff] }
 0x8bf   :  { %v2082_v14 = vpop.f32.mrf.mxu0 }
 0x8c0   :  { %553 = vrot.lane.b32.xlu0 %v542_v13, %s2318_s22  ;;  %v545_v16 = vadd.f32 %v542_v13, %v469_v15  ;;  %v1012_v13 = vld [vmem:[%s2755_s3 + $0x30] sm:$0x3]  ;;  %v986_v14 = vlaneseq }
 0x8c2   :  { %v1922_v17 = vmul.f32 -1.442695, %v545_v16  ;;  %v985_v16 = vld [vmem:[%s2775_s25 + $0x10] sm:$0xff]  ;;  %v1320_v1 = vshrl.u32 %v986_v14, 7 }
 0x8c4   :  { %2242 = vpow2.f32 %v1922_v17  ;;  %v1010_v17 = vld [vmem:[%s2755_s3 + $0x20] sm:$0xff]  ;;  %vm1321_vm10 = vcmp.lt.s32.totalorder %v1320_v1, 7  ;;  %vm1434_vm11 = vcmp.lt.s32.totalorder %v1320_v1, 6  ;;  %vm1547_vm12 = vcmp.lt.s32.totalorder %v1320_v1, 5 }
 0x8d1   :  { %v2243_v18 = vpop.eup %2242 }
 0x8d2   :  { %v549_v19 = vadd.f32 1.0, %v2243_v18  ;;  %v1009_v18 = vld [vmem:[%s2755_s3 + $0x18] sm:$0xff] }
 0x8d4   :  { %2244 = vrcp.f32 %v549_v19  ;;  %v987_v19 = vand.u32 127, %v986_v14 }
 0x8e1   :  { %v2245_v20 = vpop.eup %2244 }
 0x8e2   :  { %v563_v26 = vsub.f32 1.0, %v2245_v20  ;;  %v569_v28 = vmul.f32 %v2245_v20, %v467_v10 }
 0x932   :  { %v554_v21 = vpop.permute.xlu0 %553 }
 0x933   :  { %v556_v22 = vmul.f32 %v2245_v20, %v554_v21  ;;  %v1008_v21 = vld [vmem:[%s2755_s3 + $0x10] sm:$0xff] }
 0x935   :  { %558 = vrot.lane.b32.xlu1 %v556_v22, %s2319_s6  ;;  %v1007_v22 = vld [vmem:[%s2755_s3 + $0x8] sm:$0xff] }
 0x9a7   :  { %v559_v23 = vpop.permute.xlu1 %558 }
 0x9a8   :  { %v561_v24 = vadd.f32 %v559_v23, %v469_v15  ;;  %v1011_v15 = vld [vmem:[%s2755_s3 + $0x28] sm:$0xff]  ;;  %v1006_v23 = vld [vmem:[%s2755_s3] sm:$0xff] }
 0x9aa   :  { %2246 = vtanh.f32 %v561_v24 }
 0x9b7   :  { %v2247_v25 = vpop.eup %2246 }
 0x9b8   :  { %565 = vrot.lane.b32.xlu0 %v2247_v25, %s2320_s8 }
 0xa2a   :  { %v566_v27 = vpop.permute.xlu0 %565 }
 0xa2b   :  { %v568_v29 = vmul.f32 %v566_v27, %v563_v26 }
 0xa2d   :  { %v570_v30 = vadd.f32 %v569_v28, %v568_v29 }
 0xa2f   :  { %574 = vrot.lane.b32.xlu1 %v570_v30, %s2320_s8 }
 0xaa1   :  { %v575_v31 = vpop.permute.xlu1 %574 }
 0xaa2   :  { %2088 = vmatmul.mubr.msk.f32.vlgmr.msra.gmra.mxu1 %vm162_vm3, %v575_v31 }
 0xaa3   :  { %2098 = vmatpush3.msra.mxu1 %v2425_v2  ;;  %2101 = vmatprep.mubr.msk.f32.mxu1 %vm2317_vm1, %v2316_v3 }
 0xaa4   :  { %2099 = vmatprep.subr.mxu1 %v2316_v3 }
 0xaa5   :  { %2100 = vmatpush3.msra.mxu1 %v2434_v5 }
 0xaa6   :  { %2111 = vmatprep.subr.mxu1 %v2316_v3 }
 0xb62   :  { %v644_v32 = vpop.f32.mrf.mxu1 }
 0xb63   :  { %v645_v33 = vadd.f32 %v2462_v9, %v644_v32  ;;  %v778_v32 = vld [vmem:[#allocation2 + $0x6] ss:$8 sm:$0x3] }
 0xb64   :  { %v2089_v34 = vpop.f32.mrf.mxu1 }
 0xb65   :  { %656 = vrot.lane.b32.xlu0 %v645_v33, %s2318_s22  ;;  %v648_v36 = vadd.f32 %v645_v33, %v572_v35 }
 0xb67   :  { %v1924_v37 = vmul.f32 -1.442695, %v648_v36 }
 0xb69   :  { %2248 = vpow2.f32 %v1924_v37 }
 0xb76   :  { %v2249_v38 = vpop.eup %2248 }
 0xb77   :  { %v652_v39 = vadd.f32 1.0, %v2249_v38 }
 0xb79   :  { %2250 = vrcp.f32 %v652_v39 }
 0xb86   :  { %v2251_v40 = vpop.eup %2250 }
 0xb87   :  { %v666_v46 = vsub.f32 1.0, %v2251_v40  ;;  %v672_v48 = vmul.f32 %v2251_v40, %v570_v30 }
 0xbd7   :  { %v657_v41 = vpop.permute.xlu0 %656 }
 0xbd8   :  { %v659_v42 = vmul.f32 %v2251_v40, %v657_v41 }
 0xbda   :  { %661 = vrot.lane.b32.xlu1 %v659_v42, %s2319_s6 }
 0xc4c   :  { %v662_v43 = vpop.permute.xlu1 %661 }
 0xc4d   :  { %v664_v44 = vadd.f32 %v662_v43, %v572_v35 }
 0xc4f   :  { %2252 = vtanh.f32 %v664_v44 }
 0xc5c   :  { %v2253_v45 = vpop.eup %2252 }
 0xc5d   :  { %668 = vrot.lane.b32.xlu0 %v2253_v45, %s2320_s8 }
 0xccf   :  { %v669_v47 = vpop.permute.xlu0 %668 }
 0xcd0   :  { %v671_v49 = vmul.f32 %v669_v47, %v666_v46 }
 0xcd2   :  { %v673_v50 = vadd.f32 %v672_v48, %v671_v49 }
 0xcd4   :  { %677 = vrot.lane.b32.xlu1 %v673_v50, %s2320_s8 }
 0xd46   :  { %v678_v51 = vpop.permute.xlu1 %677 }
 0xd47   :  { %2095 = vmatmul.mubr.msk.f32.vlgmr.msra.gmra.mxu0 %vm162_vm3, %v678_v51 }
 0xd48   :  { %2105 = vmatpush3.msra.mxu0 %v2425_v2  ;;  %2108 = vmatprep.mubr.msk.f32.mxu0 %vm2317_vm1, %v2316_v3 }
 0xd49   :  { %2106 = vmatprep.subr.mxu0 %v2316_v3 }
 0xd4a   :  { %2107 = vmatpush3.msra.mxu0 %v2434_v5 }
 0xe07   :  { %v747_v52 = vpop.f32.mrf.mxu0 }
 0xe08   :  { %v748_v53 = vadd.f32 %v2462_v9, %v747_v52 }
 0xe09   :  { %v2096_v54 = vpop.f32.mrf.mxu0 }
 0xe0a   :  { %759 = vrot.lane.b32.xlu0 %v748_v53, %s2318_s22  ;;  %v751_v56 = vadd.f32 %v748_v53, %v675_v55  ;;  %v1107_v54 = vld [vmem:[%s2756_s4] sm:$0xff] }
 0xe0c   :  { %v1926_v57 = vmul.f32 -1.442695, %v751_v56  ;;  %v1108_v56 = vld [vmem:[%s2756_s4 + $0x8] sm:$0xff] }
 0xe0e   :  { %2254 = vpow2.f32 %v1926_v57  ;;  %v1109_v57 = vld [vmem:[%s2756_s4 + $0x10] sm:$0xff] }
 0xe1b   :  { %v2255_v58 = vpop.eup %2254 }
 0xe1c   :  { %v755_v59 = vadd.f32 1.0, %v2255_v58  ;;  %v1110_v58 = vld [vmem:[%s2756_s4 + $0x18] sm:$0xff] }
 0xe1e   :  { %2256 = vrcp.f32 %v755_v59  ;;  %v1210_v59 = vld [vmem:[%s2761_s9 + $0x8] sm:$0xff] }
 0xe2b   :  { %v2257_v2 = vpop.eup %2256 }
 0xe2c   :  { %v769_v4 = vsub.f32 1.0, %v2257_v2  ;;  %v775_v7 = vmul.f32 %v2257_v2, %v673_v50 }
 0xe7c   :  { %v760_v60 = vpop.permute.xlu0 %759 }
 0xe7d   :  { %v762_v61 = vmul.f32 %v2257_v2, %v760_v60  ;;  %v1209_v2 = vld [vmem:[%s2761_s9] sm:$0xff]  ;;  %v1948_v60 = vld [vmem:[%s2761_s9 + $0x18] sm:$0xff] }
 0xe7f   :  { %764 = vrot.lane.b32.xlu1 %v762_v61, %s2319_s6  ;;  %v1954_v61 = vld [vmem:[%s2761_s9 + $0x28] sm:$0xff] }
 0xef1   :  { %v765_v62 = vpop.permute.xlu1 %764 }
 0xef2   :  { %v767_v5 = vadd.f32 %v765_v62, %v675_v55  ;;  %v1953_v62 = vld [vmem:[%s2761_s9 + $0x20] sm:$0xff] }
 0xef4   :  { %2258 = vtanh.f32 %v767_v5 }
 0xf01   :  { %v2259_v63 = vpop.eup %2258 }
 0xf02   :  { %771 = vrot.lane.b32.xlu0 %v2259_v63, %s2320_s8 }
 0xf06   :  { %989 = vperm.xlu0 %2222, %v983_v0  }
 0xf74   :  { %v772_v6 = vpop.permute.xlu0 %771 }
 0xf75   :  { %v774_v8 = vmul.f32 %v772_v6, %v769_v4 }
 0xf77   :  { %v2530_v10 = vadd.f32 %v775_v7, %v774_v8 }
 0xf79   :  { %780 = vrot.lane.b32.xlu1 %v2530_v10, %s2320_s8 }
 0xf7d   :  { %992 = vperm.xlu1 %2223, %v984_v12   ;;  %v1947_v12 = vld [vmem:[%s2761_s9 + $0x10] sm:$0xff] }
 0xf81   :  { %995 = vperm.xlu1 %2223, %v985_v16   ;;  %v990_v20 = vpop.permute.xlu0 %989 }
 0xf82   :  { %vm997_vm5 = vcmp.eq.s32.totalorder %v987_v19, %v990_v20 }
 0xf83   :  { %v1931_v24 = vsel %vm997_vm5, 1.0, %v2316_v3 }
 0xfeb   :  { %v781_v11 = vpop.permute.xlu1 %780 }
 0xfec   :  { %2102 = vmatmul.mubr.msk.f32.vlgmr.msra.gmra.mxu1 %vm162_vm3, %v781_v11 }
 0xfed   :  { %2125 = vmatprep.mubr.msk.f32.mxu1 %vm2317_vm1, %v2316_v3  ;;  %2112 = vmatpush3.msk.msra.mxu1 %vm1023_vm4, %v1012_v13  ;;  %v1960_v13 = vld [vmem:[%s2761_s9 + $0x38] sm:$0xff] }
 0xfee   :  { %2113 = vmatprep.subr.mxu1 %v2316_v3 }
 0xfef   :  { %2114 = vmatpush3.msra.mxu1 %v1011_v15 }
 0xff0   :  { %2115 = vmatprep.subr.mxu1 %v2316_v3 }
 0xff1   :  { %2116 = vmatpush3.msra.mxu1 %v1010_v17 }
 0xff2   :  { %2117 = vmatprep.subr.mxu1 %v2316_v3 }
 0xff3   :  { %2118 = vmatpush3.msra.mxu1 %v1009_v18 }
 0xff4   :  { %2119 = vmatprep.subr.mxu1 %v2316_v3 }
 0xff5   :  { %2120 = vmatpush3.msra.mxu1 %v1008_v21 }
 0xff6   :  { %2121 = vmatprep.subr.mxu1 %v2316_v3 }
 0xff7   :  { %2122 = vmatpush3.msra.mxu1 %v1007_v22 }
 0xff8   :  { %2123 = vmatprep.subr.mxu1 %v2316_v3  ;;  %v993_v28 = vpop.permute.xlu1 %992 }
 0xff9   :  { %2124 = vmatpush3.msra.mxu1 %v1006_v23  ;;  %vm998_vm7 = vcmp.eq.s32.totalorder %v987_v19, %v993_v28 }
 0xffa   :  { %2126 = vmatmul.mubr.msk.f32.vlgmr.msra.gmra.mxu1 %vm1013_vm6, %v1931_v24  ;;  %v1932_v29 = vsel %vm998_vm7, 1.0, %v2316_v3  ;;  %2166 = vmatprep.subr.mxu1 %v1954_v61 }
 0xffb   :  { %2128 = vmatprep.mubr.msk.f32.mxu1 %vm2317_vm1, %v2316_v3  ;;  %2167 = vmatpush3.msra.mxu1 %v1954_v61 }
 0xffc   :  { %v996_v30 = vpop.permute.xlu1 %995  ;;  %2168 = vmatprep.subr.mxu1 %v1953_v62 }
 0xffd   :  { %vm999_vm8 = vcmp.eq.s32.totalorder %v987_v19, %v996_v30  ;;  %2169 = vmatpush3.msra.mxu1 %v1953_v62 }
 0xffe   :  { %2129 = vmatmul.mubr.msk.f32.gmra.mxu1 %vm1013_vm6, %v1932_v29  ;;  %v1933_v31 = vsel %vm999_vm8, 1.0, %v2316_v3  ;;  %2186 = vmatprep.subr.mxu1 %v2316_v3 }
 0xfff   :  { %2131 = vmatprep.mubr.msk.f32.mxu1 %vm2317_vm1, %v2316_v3 }
0x1002   :  { %2132 = vmatmul.mubr.msk.f32.gmra.mxu1 %vm1013_vm6, %v1933_v31 }
0x10ac   :  { %v850_v25 = vpop.f32.mrf.mxu1 }
0x10ad   :  { %v851_v26 = vadd.f32 %v2462_v9, %v850_v25 }
0x10ae   :  { %v2103_v27 = vpop.f32.mrf.mxu1 }
0x10af   :  { %862 = vrot.lane.b32.xlu0 %v851_v26, %s2318_s22  ;;  %v854_v33 = vadd.f32 %v851_v26, %v778_v32  ;;  %v1959_v27 = vld [vmem:[%s2761_s9 + $0x30] sm:$0xff] }
0x10b1   :  { %v1928_v34 = vmul.f32 -1.442695, %v854_v33 }
0x10b3   :  { %2260 = vpow2.f32 %v1928_v34 }
0x10ba   :  { %v1093_v40 = vpop.f32.mrf.mxu1 }
0x10bc   :  { %v2127_v41 = vpop.f32.mrf.mxu1 }
0x10be   :  { %v1098_v44 = vpop.f32.mrf.mxu1 }
0x10c0   :  { %v2261_v35 = vpop.eup %2260  ;;  %v2130_v45 = vpop.f32.mrf.mxu1 }
0x10c1   :  { %v858_v36 = vadd.f32 1.0, %v2261_v35  ;;  %v1942_v45 = vld [vmem:[%s2762_s10] ss:$0 sm:$0xff] }
0x10c2   :  { %v1103_v46 = vpop.f32.mrf.mxu1 }
0x10c3   :  { %2262 = vrcp.f32 %v858_v36  ;;  %2134 = vmatprep.subr.mxu0 %v1103_v46  ;;  %v2671_v36 = vld [vmem:[#allocation2 + $0x7] ss:$8 sm:$0x3] }
0x10c4   :  { %v2133_v47 = vpop.f32.mrf.mxu1 }
0x10d0   :  { %v2263_v37 = vpop.eup %2262 }
0x10d1   :  { %v872_v49 = vsub.f32 1.0, %v2263_v37  ;;  %v878_v51 = vmul.f32 %v2263_v37, %v2530_v10 }
0x1121   :  { %v863_v38 = vpop.permute.xlu0 %862 }
0x1122   :  { %v865_v39 = vmul.f32 %v2263_v37, %v863_v38 }
0x1124   :  { %867 = vrot.lane.b32.xlu1 %v865_v39, %s2319_s6 }
0x1196   :  { %v868_v42 = vpop.permute.xlu1 %867 }
0x1197   :  { %v870_v43 = vadd.f32 %v868_v42, %v778_v32 }
0x1199   :  { %2264 = vtanh.f32 %v870_v43 }
0x11a6   :  { %v2265_v48 = vpop.eup %2264 }
0x11a7   :  { %874 = vrot.lane.b32.xlu0 %v2265_v48, %s2320_s8 }
0x1219   :  { %v875_v50 = vpop.permute.xlu0 %874 }
0x121a   :  { %v877_v52 = vmul.f32 %v875_v50, %v872_v49 }
0x121c   :  { %v2586_v53 = vadd.f32 %v878_v51, %v877_v52 }
0x121e   :  { %883 = vrot.lane.b32.xlu1 %v2586_v53, %s2320_s8 }
0x1290   :  { %v884_v55 = vpop.permute.xlu1 %883 }
0x1291   :  { %2109 = vmatmul.mubr.msk.f32.vlgmr.msra.gmra.mxu0 %vm162_vm3, %v884_v55 }
0x1292   :  { %2135 = vmatpush3.msra.mxu0 %v1103_v46  ;;  %2140 = vmatprep.mubr.msk.f32.mxu0 %vm1111_vm9, %v1107_v54 }
0x1293   :  { %2136 = vmatprep.subr.mxu0 %v1098_v44 }
0x1294   :  { %2137 = vmatpush3.msra.mxu0 %v1098_v44 }
0x1295   :  { %2138 = vmatprep.subr.mxu0 %v1093_v40 }
0x1296   :  { %2139 = vmatpush3.msra.mxu0 %v1093_v40 }
0x1297   :  { %2141 = vmatmul.mubr.msk.f32.vlgmr.msra.gmra.mxu0 %vm1111_vm9, %v1108_v56  ;;  %2146 = vmatprep.subr.mxu0 %v1210_v59 }
0x1298   :  { %2143 = vmatprep.mubr.msk.f32.mxu0 %vm1111_vm9, %v1109_v57  ;;  %2147 = vmatpush3.msra.mxu0 %v1210_v59 }
0x1299   :  { %2148 = vmatprep.subr.mxu0 %v1209_v2 }
0x129a   :  { %2149 = vmatpush3.msra.mxu0 %v1209_v2 }
0x129b   :  { %2144 = vmatmul.mubr.msk.f32.gmra.mxu0 %vm1111_vm9, %v1110_v58  ;;  %2156 = vmatprep.subr.mxu0 %v1948_v60 }
0x1351   :  { %v953_v5 = vpop.f32.mrf.mxu0 }
0x1352   :  { %v2624_v63 = vadd.f32 %v2462_v9, %v953_v5 }
0x1353   :  { %v2110_v0 = vpop.f32.mrf.mxu0 }
0x1354   :  { %965 = vrot.lane.b32.xlu0 %v2624_v63, %s2318_s22  ;;  %v957_v37 = vadd.f32 %v2624_v63, %v2671_v36 }
0x1356   :  { %v1930_v38 = vmul.f32 -1.442695, %v957_v37 }
0x1357   :  { %v2142_v4 = vpop.f32.mrf.mxu0 }
0x1358   :  { %v1316_v6 = vrot.slane %v2142_v4, 1  ;;  %v1431_v7 = vrot.slane %v2142_v4, 2  ;;  %v1544_v23 = vrot.slane %v2142_v4, 3  ;;  %2266 = vpow2.f32 %v1930_v38 }
0x1359   :  { %v1190_v8 = vpop.f32.mrf.mxu0 }
0x135a   :  { %v1315_v10 = vrot.slane %v1190_v8, 1  ;;  %v1430_v11 = vrot.slane %v1190_v8, 2  ;;  %2150 = vmatprep.mubr.msk.f32.mxu0 %vm162_vm3, %v1190_v8  ;;  %v1543_v24 = vrot.slane %v1190_v8, 3  ;;  %v1661_v8 = vld [vmem:[%s2763_s11 + $0x8] sm:$0xff] }
0x135b   :  { %v2145_v9 = vpop.f32.mrf.mxu0  ;;  %2151 = vmatmul.mubr.msk.f32.vlgmr.msra.gmra.mxu0 %vm162_vm3, %v2142_v4 }
0x135c   :  { %2157 = vmatpush3.msra.mxu0 %v1948_v60  ;;  %v1318_v14 = vrot.slane %v2145_v9, 1  ;;  %v1433_v15 = vrot.slane %v2145_v9, 2  ;;  %v1324_v17 = vsel %vm1321_vm10, %v1315_v10, %v1316_v6  ;;  %v1437_v18 = vsel %vm1434_vm11, %v1430_v11, %v1431_v7 }
0x135d   :  { %v1200_v16 = vpop.f32.mrf.mxu0  ;;  %2158 = vmatprep.subr.mxu0 %v1947_v12  ;;  %2170 = vmatprep.mubr.msk.f32.mxu1 %vm162_vm3, %v1437_v18  ;;  %v1546_v31 = vrot.slane %v2145_v9, 3  ;;  %v1550_v32 = vsel %vm1547_vm12, %v1543_v24, %v1544_v23 }
0x135e   :  { %v1317_v19 = vrot.slane %v1200_v16, 1  ;;  %v1432_v20 = vrot.slane %v1200_v16, 2  ;;  %2153 = vmatprep.mubr.msk.f32.mxu0 %vm162_vm3, %v1200_v16  ;;  %2159 = vmatpush3.msra.mxu0 %v1947_v12  ;;  %v1438_v28 = vsel %vm1434_vm11, %v1433_v15, %v1430_v11  ;;  %v1545_v29 = vrot.slane %v1200_v16, 3 }
0x135f   :  { %2154 = vmatmul.mubr.msk.f32.gmra.mxu0 %vm162_vm3, %v2145_v9  ;;  %2176 = vmatprep.subr.mxu0 %v1960_v13  ;;  %v1325_v30 = vsel %vm1321_vm10, %v1318_v14, %v1315_v10  ;;  %v1551_v35 = vsel %vm1547_vm12, %v1546_v31, %v1543_v24 }
0x1360   :  { %2160 = vmatprep.mubr.msk.f32.mxu0 %vm162_vm3, %v1324_v17  ;;  %v1323_v21 = vsel %vm1321_vm10, %v1316_v6, %v1317_v19  ;;  %v1436_v22 = vsel %vm1434_vm11, %v1431_v7, %v1432_v20  ;;  %v1322_v25 = vsel %vm1321_vm10, %v1317_v19, %v1318_v14  ;;  %v1435_v26 = vsel %vm1434_vm11, %v1432_v20, %v1433_v15 }
0x1361   :  { %2171 = vmatmul.mubr.msk.f32.vlgmr.msra.gmra.mxu1 %vm162_vm3, %v1436_v22  ;;  %v1549_v33 = vsel %vm1547_vm12, %v1544_v23, %v1545_v29  ;;  %v1548_v34 = vsel %vm1547_vm12, %v1545_v29, %v1546_v31 }
0x1362   :  { %2173 = vmatprep.mubr.msk.f32.mxu1 %vm162_vm3, %v1435_v26 }
0x1363   :  { %2161 = vmatmul.mubr.msk.f32.vlgmr.msra.gmra.mxu0 %vm162_vm3, %v1323_v21 }
0x1364   :  { %2163 = vmatprep.mubr.msk.f32.mxu0 %vm162_vm3, %v1322_v25  ;;  %2177 = vmatpush3.msra.mxu0 %v1960_v13  ;;  %v1660_v13 = vld [vmem:[%s2763_s11] sm:$0xff]  ;;  %s2324_s11 = smov [#allocation5]  }
0x1365   :  { %2178 = vmatprep.subr.mxu0 %v1959_v27  ;;  %2174 = vmatmul.mubr.msk.f32.gmra.mxu1 %vm162_vm3, %v1438_v28  ;;  %v2267_v39 = vpop.eup %2266  ;;  %s1900_s7 = sshll.u32 %s2324_s11, 4  ;;  %s1901_s7 = int_to_ptr.vmem [resolvable:$true] %s1900_s7 }
0x1366   :  { %2179 = vmatpush3.msra.mxu0 %v1959_v27  ;;  %2198 = vmatprep.mubr.msk.f32.mxu1 %vm2317_vm1, %v2316_v3  ;;  %v961_v40 = vadd.f32 1.0, %v2267_v39  ;;  %s2272_s1 = scalar_lea.vmem %s1901_s7, 32  ;;  %p2277_p1 = scmp.lt.s32.totalorder %s1901_s7, %s1901_s7 }
0x1367   :  { %2164 = vmatmul.mubr.msk.f32.gmra.mxu0 %vm162_vm3, %v1325_v30  ;;  %2201 = vmatprep.subr.mxu0 %v2316_v3  ;;  %p2273_p0 = scmp.ne.s32.totalorder %s1901_s7, %s2272_s1  ;;  %p2278_p2 = scmp.lt.s32.totalorder %s2272_s1, %s2272_s1 }
0x1368   :  { %2180 = vmatprep.mubr.msk.f32.mxu0 %vm162_vm3, %v1550_v32  ;;  %2268 = vrcp.f32 %v961_v40 }
0x1369   :  { %p2279_p3 = por %p2278_p2, %p2277_p1 }
0x136b   :  { %2181 = vmatmul.mubr.msk.f32.vlgmr.msra.gmra.mxu0 %vm162_vm3, %v1549_v33  ;;  %p2280_p4 = pnand %p2279_p3, %p2273_p0 }
0x136c   :  { %2183 = vmatprep.mubr.msk.f32.mxu0 %vm162_vm3, %v1548_v34 }
0x136f   :  { %2184 = vmatmul.mubr.msk.f32.gmra.mxu0 %vm162_vm3, %v1551_v35 }
0x1370   :  { %2209 = vmatprep.mubr.msk.f32.mxu0 %vm2317_vm1, %v2316_v3  ;;  %vm1703_vm1 = vcmask 369664  }
0x1375   :  { %v2675_v41 = vpop.eup %2268 }
0x13c6   :  { %v966_v42 = vpop.permute.xlu0 %965 }
0x13c7   :  { %v968_v43 = vmul.f32 %v2675_v41, %v966_v42 }
0x13c9   :  { %970 = vrot.lane.b32.xlu1 %v968_v43, %s2319_s6 }
0x141b   :  { %v2152_v44 = vpop.f32.mrf.mxu0 }
0x141c   :  { %v1302_v48 = vadd.f32 %v2152_v44, %v1942_v45 }
0x141d   :  { %v1296_v46 = vpop.f32.mrf.mxu0 }
0x141e   :  { %v1297_v51 = vadd.f32 %v1942_v45, %v1296_v46  ;;  %v1709_v46 = vld [vmem:[%s2764_s12 + $0x20] sm:$0xff] }
0x141f   :  { %v2155_v47 = vpop.f32.mrf.mxu0 }
0x1420   :  { %v1312_v55 = vadd.f32 %v2155_v47, %v1942_v45 }
0x1421   :  { %v1306_v49 = vpop.f32.mrf.mxu0  ;;  %v2172_v50 = vpop.f32.mrf.mxu1 }
0x1422   :  { %v1307_v58 = vadd.f32 %v1942_v45, %v1306_v49  ;;  %v1710_v45 = vld [vmem:[%s2764_s12 + $0x28] sm:$0x3f] }
0x1423   :  { %v2162_v52 = vpop.f32.mrf.mxu0  ;;  %v1520_v54 = vpop.f32.mrf.mxu1  ;;  %2187 = vmatpush3.msk.msra.mxu1 %vm1722_vm13, %v1710_v45 }
0x1424   :  { %v1427_v56 = vadd.f32 %v2162_v52, %v1302_v48  ;;  %2188 = vmatprep.subr.mxu1 %v2316_v3  ;;  %v1708_v48 = vld [vmem:[%s2764_s12 + $0x18] sm:$0xff]  ;;  %v1706_v52 = vld [vmem:[%s2764_s12 + $0x8] sm:$0xff] }
0x1425   :  { %v1407_v57 = vpop.f32.mrf.mxu0  ;;  %v2175_v60 = vpop.f32.mrf.mxu1  ;;  %2189 = vmatpush3.msra.mxu1 %v1709_v46 }
0x1426   :  { %v1426_v59 = vadd.f32 %v1407_v57, %v1297_v51  ;;  %v1540_v62 = vadd.f32 %v2172_v50, %v1427_v56  ;;  %2190 = vmatprep.subr.mxu1 %v2316_v3  ;;  %v1707_v51 = vld [vmem:[%s2764_s12 + $0x10] sm:$0xff]  ;;  %v975_v57 = vsub.f32 1.0, %v2675_v41 }
0x1427   :  { %v2165_v2 = vpop.f32.mrf.mxu0  ;;  %v1530_v4 = vpop.f32.mrf.mxu1  ;;  %2191 = vmatpush3.msra.mxu1 %v1708_v48  ;;  %v1799_v56 = vld [vmem:[%s2766_s14 + $0x10] sm:$0xff] }
0x1428   :  { %v1429_v61 = vadd.f32 %v2165_v2, %v1312_v55  ;;  %v1539_v0 = vadd.f32 %v1520_v54, %v1426_v59  ;;  %2192 = vmatprep.subr.mxu1 %v2316_v3  ;;  %v1705_v54 = vld [vmem:[%s2764_s12] sm:$0xff]  ;;  %v1800_v55 = vld [vmem:[%s2766_s14 + $0x18] sm:$0xff]  ;;  %v981_v59 = vmul.f32 %v2675_v41, %v2586_v53 }
0x1429   :  { %v1417_v5 = vpop.f32.mrf.mxu0  ;;  %2193 = vmatpush3.msra.mxu1 %v1707_v51  ;;  %2202 = vmatpush3.msra.mxu0 %v1800_v55 }
0x142a   :  { %v1428_v63 = vadd.f32 %v1417_v5, %v1307_v58  ;;  %v1542_v7 = vadd.f32 %v2175_v60, %v1429_v61  ;;  %2194 = vmatprep.subr.mxu1 %v2316_v3  ;;  %2203 = vmatprep.subr.mxu0 %v2316_v3  ;;  %v1684_v61 = vld [vmem:[%s2754_s2] sm:$0x3] }
0x142b   :  { %v2182_v1 = vpop.f32.mrf.mxu0  ;;  %2195 = vmatpush3.msra.mxu1 %v1706_v52  ;;  %2204 = vmatpush3.msra.mxu0 %v1799_v56 }
0x142c   :  { %v1653_v6 = vadd.f32 %v2182_v1, %v1540_v62  ;;  %v1541_v9 = vadd.f32 %v1530_v4, %v1428_v63  ;;  %2196 = vmatprep.subr.mxu1 %v2316_v3  ;;  %2205 = vmatprep.subr.mxu0 %v2316_v3  ;;  %v1797_v1 = vld [vmem:[%s2766_s14] sm:$0xff] }
0x142d   :  { %v1633_v10 = vpop.f32.mrf.mxu0  ;;  %2197 = vmatpush3.msra.mxu1 %v1705_v54  ;;  %v1965_v4 = vld [vmem:[%s2765_s13] ss:$0 sm:$0xff] }
0x142e   :  { %v1657_v11 = vmax.f32 %v1653_v6, 0.0  ;;  %v1652_v12 = vadd.f32 %v1633_v10, %v1539_v0  ;;  %v1798_v0 = vld [vmem:[%s2766_s14 + $0x8] sm:$0xff] }
0x142f   :  { %v2185_v14 = vpop.f32.mrf.mxu0  ;;  %2206 = vmatpush3.msra.mxu0 %v1798_v0 }
0x1430   :  { %v1663_v15 = vadd.f32 %v1661_v8, %v1657_v11  ;;  %v1656_v16 = vmax.f32 %v1652_v12, 0.0  ;;  %v1655_v17 = vadd.f32 %v2185_v14, %v1542_v7  ;;  %2207 = vmatprep.subr.mxu0 %v2316_v3 }
0x1431   :  { %v1643_v18 = vpop.f32.mrf.mxu0  ;;  %2208 = vmatpush3.msra.mxu0 %v1797_v1 }
0x1432   :  { %v1667_v19 = vsel %vm1111_vm9, %v1663_v15, -inf  ;;  %v1662_v20 = vadd.f32 %v1660_v13, %v1656_v16  ;;  %v1659_v21 = vmax.f32 %v1655_v17, 0.0  ;;  %v1654_v22 = vadd.f32 %v1643_v18, %v1541_v9 }
0x1434   :  { %v1666_v23 = vsel %vm1111_vm9, %v1662_v20, -inf  ;;  %v1665_v24 = vadd.f32 %v1661_v8, %v1659_v21  ;;  %v1658_v25 = vmax.f32 %v1654_v22, 0.0 }
0x1435   :  { %v1668_v26 = vmax.f32 %v1666_v23, %v1667_v19 }
0x1436   :  { %v1676_v27 = vsel %vm1111_vm9, %v1665_v24, -inf  ;;  %v1664_v28 = vadd.f32 %v1660_v13, %v1658_v25 }
0x1437   :  { %v1669_v29 = vrot.slane %v1668_v26, 4 }
0x1438   :  { %v1675_v30 = vsel %vm1111_vm9, %v1664_v28, -inf }
0x1439   :  { %v1670_v31 = vmax.f32 %v1668_v26, %v1669_v29  ;;  %v1677_v32 = vmax.f32 %v1675_v30, %v1676_v27 }
0x143b   :  { %v971_v33 = vpop.permute.xlu1 %970  ;;  %v1678_v34 = vrot.slane %v1677_v32, 4  ;;  %v1671_v37 = vrot.slane %v1670_v31, 2 }
0x143c   :  { %v973_v35 = vadd.f32 %v971_v33, %v2671_v36 }
0x143d   :  { %v1679_v38 = vmax.f32 %v1677_v32, %v1678_v34  ;;  %v1672_v40 = vmax.f32 %v1670_v31, %v1671_v37 }
0x143e   :  { %2270 = vtanh.f32 %v973_v35 }
0x143f   :  { %v1680_v39 = vrot.slane %v1679_v38, 2  ;;  %v1673_v43 = vrot.slane %v1672_v40, 1 }
0x1441   :  { %v1681_v42 = vmax.f32 %v1679_v38, %v1680_v39  ;;  %v1674_v47 = vmax.f32 %v1672_v40, %v1673_v43 }
0x1443   :  { %v1682_v44 = vrot.slane %v1681_v42, 1 }
0x1445   :  { %v1683_v36 = vmax.f32 %v1681_v42, %v1682_v44 }
0x1447   :  { %v1692_v50 = vsel %vm1691_vm14, %v1683_v36, %v1674_v47 }
0x144b   :  { %v2271_v49 = vpop.eup %2270 }
0x144c   :  { %977 = vrot.lane.b32.xlu0 %v2271_v49, %s2320_s8 }
0x1450   :  { %1693 = vrot.lane.b32.xlu0 %v1692_v50, %s2322_s24 }
0x14be   :  { %v978_v58 = vpop.permute.xlu0 %977 }
0x14bf   :  { %v980_v2 = vmul.f32 %v978_v58, %v975_v57 }
0x14c1   :  { %v982_v60 = vadd.f32 %v981_v59, %v980_v2 }
0x14c2   :  { %v1694_v5 = vpop.permute.xlu0 %1693 }
0x14c3   :  { %1686 = vrot.lane.b32.xlu1 %v982_v60, %s2320_s8 }
0x14c7   :  { %1697 = vrot.lane.b32.xlu1 %v1684_v61, %s2323_s18 }
0x1535   :  { %v1687_v62 = vpop.permute.xlu1 %1686 }
0x1536   :  { %v1700_v63 = vsel %vm162_vm3, %v1687_v62, %v1694_v5 }
0x1539   :  { %v1698_v53 = vpop.permute.xlu1 %1697 }
0x153a   :  { %v1702_v41 = vsel %vm1701_vm15, %v1700_v63, %v1698_v53 }
0x153b   :  { %2199 = vmatmul.mubr.msk.f32.vlgmr.msra.gmra.mxu1 %vm1718_vm0, %v1702_v41  ;;  %1704 = vst.msk [vmem:[#allocation5] sm:$0x3] %vm1703_vm1, %v1702_v41 }
0x15fb   :  { %v1792_v6 = vpop.f32.mrf.mxu1 }
0x15fc   :  { %v1793_v7 = vadd.f32 %v1965_v4, %v1792_v6 }
0x15fd   :  { %v2200_v8 = vpop.f32.mrf.mxu1 }
0x15fe   :  { %v1796_v10 = vmax.f32 %v1793_v7, 0.0 }
0x1600   :  { %2210 = vmatmul.mubr.msk.f32.vlgmr.msra.gmra.mxu0 %vm1808_vm2, %v1796_v10 }
0x1601   :  { %2283 = shalt.err (!%p2280_p4)
}
0x1602   :  { %1903 = dma.vmem_to_hbm [thread:$0]  %s1901_s7, 32, %s2769_s17, [#allocation6]   ;;  %v1968_v3 = vld [vmem:[%s2767_s15] ss:$0 sm:$0xff]  ;;  %vm1882_vm3 = vcmask 33792  }
0x1603   :  { %s2325_s23 = smov [#allocation3]  }
0x1604   :  { %s1890_s24 = sshll.u32 %s2325_s23, 4  ;;  %s1891_s24 = int_to_ptr.vmem [resolvable:$true] %s1890_s24 }
0x1605   :  { %s2292_s4 = scalar_lea.vmem %s1891_s24, 32  ;;  %p2297_p6 = scmp.lt.s32.totalorder %s1891_s24, %s1891_s24 }
0x1606   :  { %p2293_p5 = scmp.ne.s32.totalorder %s1891_s24, %s2292_s4  ;;  %p2298_p7 = scmp.lt.s32.totalorder %s2292_s4, %s2292_s4 }
0x1608   :  { %p2299_p8 = por %p2298_p7, %p2297_p6 }
0x160a   :  { %p2300_p9 = pnand %p2299_p8, %p2293_p5 }
0x16c0   :  { %v1878_v11 = vpop.f32.mrf.mxu0 }
0x16c1   :  { %v1879_v12 = vadd.f32 %v1968_v3, %v1878_v11 }
0x16c2   :  { %v2211_v9 = vpop.f32.mrf.mxu0 }
0x16c3   :  { %1883 = vst.msk [vmem:[#allocation3] sm:$0x3] %vm1882_vm3, %v1879_v12 }
0x16c4   :  { %2303 = shalt.err (!%p2300_p9)
}
0x16c5   :  { %1893 = dma.vmem_to_hbm [thread:$0]  %s1891_s24, 32, %s2768_s16, [#allocation4]  }
0x16c6   :  { %2312 = dma.done.wait [#allocation4], 32  }
0x16c7   :  { %2313 = vsyncadd [#allocation4], 4294967264 }
0x16c8   :  { %2314 = dma.done.wait [#allocation6], 32  }
0x16c9   :  { %2315 = vsyncadd [#allocation6], 4294967264 }
0x16ca   :  { %1910 = vsyncpa [#allocation4], 1 }
0x16cb   :  { %1911 = vsyncpa [#allocation6], 1 }

</bundles_post_ra>
